<compile_context>
chip_gen: v7x
topology: tpu7x:2x2x1
jax: 0.10.0
libtpu: 0.0.40
codegen_flags: <defaults>
</compile_context>

<pallas_src>
import functools

import jax
import jax.numpy as jnp
from jax import lax
from jax.experimental import pallas as pl
from jax.experimental.pallas import tpu as pltpu


def _multispike(x):
    # Multispike(lens=4): floor(clamp(4*x, 0, 4) + 0.5) / 4
    return jnp.floor(jnp.clip(4.0 * x, 0.0, 4.0) + 0.5) * 0.25


def _round_up(a, b):
    return ((a + b - 1) // b) * b


# ----------------------------------------------------------------------------
# Pass 1: partial KV per shard.  kv_ref <- sum_n k[n]^T v[n] over this shard's
# row tiles (reduction axis = grid axis 1, "arbitrary"; shard axis 0 "parallel").
# ----------------------------------------------------------------------------
def _kv_partial_kernel(x_ref, wkv_ref, kv_ref):
    i = pl.program_id(1)

    @pl.when(i == 0)
    def _():
        kv_ref[...] = jnp.zeros_like(kv_ref)

    c = kv_ref.shape[-1]
    x_s = _multispike(x_ref[...].astype(jnp.float32))
    # Fused [k|v] projection: (TM, C) @ (C, 2C) -> fills a 256-wide MXU.
    kv_cat = _multispike(
        jnp.dot(x_s, wkv_ref[...], preferred_element_type=jnp.float32))
    # Spiked activations are exact multiples of 0.25 in [0, 1] -> bf16-exact;
    # products are multiples of 1/16 and sums stay << 2^24, so f32 accumulation
    # keeps KV bit-identical to the f32 reference.
    k = kv_cat[:, :c].astype(jnp.bfloat16)
    v = kv_cat[:, c:].astype(jnp.bfloat16)
    # kv += k^T @ v : contract the row (sublane) axis of both operands.
    kv_ref[...] += lax.dot_general(
        k, v, (((0,), (0,)), ((), ())), preferred_element_type=jnp.float32)


# ----------------------------------------------------------------------------
# Pass 2: out_tile = Multispike(Multispike(x) @ Wq) @ M,
# where M = 0.25 * (block-diag-masked KV) @ Wproj is precomputed and passed in
# as a bf16 hi/lo pair (f32-accurate, two native bf16 matmuls).
# ----------------------------------------------------------------------------
def _attn_out_kernel(x_ref, wq_ref, mhi_ref, mlo_ref, o_ref):
    x_s = _multispike(x_ref[...].astype(jnp.float32))
    q = _multispike(
        jnp.dot(x_s, wq_ref[...], preferred_element_type=jnp.float32))
    q16 = q.astype(jnp.bfloat16)  # exact
    out = jnp.dot(q16, mhi_ref[...], preferred_element_type=jnp.float32)
    out = out + jnp.dot(q16, mlo_ref[...], preferred_element_type=jnp.float32)
    o_ref[...] = out.astype(o_ref.dtype)


def spike_attention_forward(x, wq, wk, wv, wproj, *, num_heads, tm=512):
    """x: (N, C) f32; wq/wk/wv/wproj: (C, C) f32 (x @ W convention); returns (N, C)."""
    n, c = x.shape
    assert c % num_heads == 0
    assert all(w.shape == (c, c) for w in (wq, wk, wv, wproj))

    # Row tiling: large tiles (amortize grid-step overhead, deepen the k^T v
    # contraction), clamped so tiny inputs don't over-pad.
    tm_eff = min(tm, _round_up(n, 8))
    n_tiles = pl.cdiv(n, tm_eff)
    # Split the KV reduction across (up to) 2 TensorCores on v7x via a leading
    # "parallel" grid axis; harmless (just two output blocks) on v5e/v6e.
    num_shards = 2 if n_tiles >= 2 else 1
    tiles_per_shard = pl.cdiv(n_tiles, num_shards)
    n_pad = num_shards * tiles_per_shard * tm_eff
    x_p = x if n_pad == n else jnp.zeros((n_pad, c), x.dtype).at[:n].set(x)

    # Fused K|V weight: (C, 2C) keeps a 256-wide MXU output fully fed.
    wkv = jnp.concatenate([wk, wv], axis=1)

    # ---- Pass 1: partial KV per shard (reduction over row tiles). ----
    kv_parts = pl.pallas_call(
        _kv_partial_kernel,
        out_shape=jax.ShapeDtypeStruct((num_shards, c, c), jnp.float32),
        grid_spec=pltpu.PrefetchScalarGridSpec(
            num_scalar_prefetch=0,
            grid=(num_shards, tiles_per_shard),
            in_specs=[
                # x row tile for (shard p, step i)
                pl.BlockSpec((tm_eff, c),
                             lambda p, i: (p * tiles_per_shard + i, 0)),
                # Wkv resident in VMEM
                pl.BlockSpec((c, 2 * c), lambda p, i: (0, 0)),
            ],
            # One resident (C, C) accumulator block per shard (squeezed lead dim).
            out_specs=pl.BlockSpec((None, c, c), lambda p, i: (p, 0, 0)),
        ),
        compiler_params=pltpu.CompilerParams(
            dimension_semantics=("parallel", "arbitrary")),
    )(x_p, wkv)

    # ---- Tiny O(C^2) epilogue in XLA: sum shards, per-head block-diag mask,
    # fold scale and the output projection into a single matrix M. ----
    kv = kv_parts.sum(axis=0) if num_shards > 1 else kv_parts[0]
    d = c // num_heads
    row_h = jnp.arange(c)[:, None] // d
    col_h = jnp.arange(c)[None, :] // d
    mask = (row_h == col_h).astype(jnp.float32)      # block-diagonal = per-head
    m = (0.25 * (kv * mask)) @ wproj                 # (C, C) f32
    # bf16 hi/lo split of M: near-f32 accuracy, native bf16 MXU rate in pass 2.
    # (KV / M stay f32 end-to-end; only the split operands are bf16.)
    m_hi = m.astype(jnp.bfloat16)
    m_lo = (m - m_hi.astype(jnp.float32)).astype(jnp.bfloat16)

    # ---- Pass 2: per-row-tile output (independent tiles -> parallel). ----
    grid2 = (n_pad // tm_eff,)
    out_p = pl.pallas_call(
        _attn_out_kernel,
        out_shape=jax.ShapeDtypeStruct((n_pad, c), jnp.float32),
        grid_spec=pltpu.PrefetchScalarGridSpec(
            num_scalar_prefetch=0,
            grid=grid2,
            in_specs=[
                pl.BlockSpec((tm_eff, c), lambda i: (i, 0)),  # x row tile
                pl.BlockSpec((c, c), lambda i: (0, 0)),       # Wq (resident)
                pl.BlockSpec((c, c), lambda i: (0, 0)),       # M_hi (resident)
                pl.BlockSpec((c, c), lambda i: (0, 0)),       # M_lo (resident)
            ],
            out_specs=pl.BlockSpec((tm_eff, c), lambda i: (i, 0)),
        ),
        compiler_params=pltpu.CompilerParams(
            dimension_semantics=("parallel",)),
    )(x_p, wq, m_hi, m_lo)

    return out_p[:n]


# ----------------------------------------------------------------------------
# Pure-JAX reference mirroring the PyTorch per-head computation exactly (f32).
# ----------------------------------------------------------------------------
def _reference(x, wq, wk, wv, wproj, num_heads):
    n, c = x.shape
    d = c // num_heads
    x_s = _multispike(x)
    q = _multispike(x_s @ wq)
    k = _multispike(x_s @ wk)
    v = _multispike(x_s @ wv)
    qh = q.reshape(n, num_heads, d).transpose(1, 0, 2)  # (H, N, D)
    kh = k.reshape(n, num_heads, d).transpose(1, 0, 2)
    vh = v.reshape(n, num_heads, d).transpose(1, 0, 2)
    kv = jnp.einsum("hnd,hne->hde", kh, vh)
    attn = jnp.einsum("hnd,hde->hne", qh, kv) * 0.25
    attn = attn.transpose(1, 0, 2).reshape(n, c)
    return attn @ wproj


def _linear_init(key, c):
    # torch nn.Linear default: U(-1/sqrt(fan_in), 1/sqrt(fan_in)); stored as (in, out).
    bound = 1.0 / (c ** 0.5)
    return jax.random.uniform(key, (c, c), jnp.float32, minval=-bound, maxval=bound)


if __name__ == "__main__":
    DIM, HEADS = 128, 8

    key = jax.random.PRNGKey(0)
    kx, kq, kk, kv_, kp, kx2 = jax.random.split(key, 6)

    wq = _linear_init(kq, DIM)
    wk = _linear_init(kk, DIM)
    wv = _linear_init(kv_, DIM)
    wproj = _linear_init(kp, DIM)

    fwd = jax.jit(functools.partial(spike_attention_forward,
                                    num_heads=HEADS, tm=512))

    # Test 1: N=256 spots (single tile, single KV shard).
    x = jax.random.normal(kx, (256, DIM), dtype=jnp.float32)
    out = jax.block_until_ready(fwd(x, wq, wk, wv, wproj))
    ref = _reference(x, wq, wk, wv, wproj, HEADS)
    assert out.shape == (256, DIM)
    assert jnp.allclose(out, ref, rtol=1e-4, atol=1e-3), "mismatch vs reference (N=256)"

    # Test 2: N=700 (exercises zero-row padding and the 2-shard KV reduction).
    x2 = jax.random.normal(kx2, (700, DIM), dtype=jnp.float32)
    out2 = jax.block_until_ready(fwd(x2, wq, wk, wv, wproj))
    ref2 = _reference(x2, wq, wk, wv, wproj, HEADS)
    assert out2.shape == (700, DIM)
    assert jnp.allclose(out2, ref2, rtol=1e-4, atol=1e-3), "mismatch vs reference (N=700)"

    # TODO(synk): backward pass (surrogate gradient of multispike) not implemented;
    # forward only, matching the requested module semantics.
    print("KERNEL_OK")
</pallas_src>

<mosaic_0001>
module attributes {stable_mosaic.version = 11 : i64} {
  func.func @_kv_partial_kernel(%arg0: i32, %arg1: i32, %arg2: memref<256x128xf32, #tpu.memory_space<vmem>>, %arg3: memref<128x256xf32, #tpu.memory_space<vmem>>, %arg4: memref<1x128x128xf32, #tpu.memory_space<vmem>>) attributes {dimension_semantics = [#tpu.dimension_semantics<parallel>, #tpu.dimension_semantics<arbitrary>], iteration_bounds = array<i64: 1, 1>, scalar_prefetch = 0 : i64, scratch_operands = 0 : i64, tpu.core_type = #tpu.core_type<tc>, window_params = [{transform_indices = @transform_0, window_bounds = array<i64: 256, 128>}, {pipeline_mode = #tpu.pipeline_mode<synchronous>, transform_indices = @transform_1, window_bounds = array<i64: 128, 256>}, {transform_indices = @transform_2, window_bounds = array<i64: 1, 128, 128>}]} {
    %c0_i32 = arith.constant 0 : i32
    %0 = arith.cmpi eq, %arg1, %c0_i32 : i32
    %1 = arith.extui %0 : i1 to i32
    %c0_i32_0 = arith.constant 0 : i32
    %2 = arith.cmpi ne, %1, %c0_i32_0 : i32
    scf.if %2 {
      %cst_21 = arith.constant 0.000000e+00 : f32
      %39 = vector.broadcast %cst_21 : f32 to vector<128x128xf32>
      %c0_22 = arith.constant 0 : index
      %c0_23 = arith.constant 0 : index
      %c0_24 = arith.constant 0 : index
      %40 = vector.load %arg4[%c0_22, %c0_23, %c0_24] : memref<1x128x128xf32, #tpu.memory_space<vmem>>, vector<1x128x128xf32>
      %41 = vector.shape_cast %40 : vector<1x128x128xf32> to vector<128x128xf32>
      %42 = vector.shape_cast %39 : vector<128x128xf32> to vector<1x128x128xf32>
      tpu.vector_store %arg4[%c0_22, %c0_23, %c0_24], %42 {strides = array<i32>} : memref<1x128x128xf32, #tpu.memory_space<vmem>>, vector<1x128x128xf32>,
    } else {
    }
    %c0 = arith.constant 0 : index
    %c0_1 = arith.constant 0 : index
    %3 = vector.load %arg2[%c0, %c0_1] : memref<256x128xf32, #tpu.memory_space<vmem>>, vector<256x128xf32>
    %cst = arith.constant 4.000000e+00 : f32
    %4 = vector.broadcast %cst : f32 to vector<256x128xf32>
    %5 = arith.mulf %4, %3 : vector<256x128xf32>
    %cst_2 = arith.constant 0.000000e+00 : f32
    %cst_3 = arith.constant 4.000000e+00 : f32
    %6 = vector.broadcast %cst_2 : f32 to vector<256x128xf32>
    %7 = arith.maximumf %6, %5 : vector<256x128xf32>
    %8 = vector.broadcast %cst_3 : f32 to vector<256x128xf32>
    %9 = arith.minimumf %8, %7 : vector<256x128xf32>
    %cst_4 = arith.constant 5.000000e-01 : f32
    %10 = vector.broadcast %cst_4 : f32 to vector<256x128xf32>
    %11 = arith.addf %9, %10 : vector<256x128xf32>
    %12 = math.floor %11 : vector<256x128xf32>
    %cst_5 = arith.constant 2.500000e-01 : f32
    %13 = vector.broadcast %cst_5 : f32 to vector<256x128xf32>
    %14 = arith.mulf %12, %13 : vector<256x128xf32>
    %c0_6 = arith.constant 0 : index
    %c0_7 = arith.constant 0 : index
    %15 = vector.load %arg3[%c0_6, %c0_7] : memref<128x256xf32, #tpu.memory_space<vmem>>, vector<128x256xf32>
    %cst_8 = arith.constant dense<0.000000e+00> : vector<256x256xf32>
    %16 = tpu.matmul %14, %15, %cst_8 {dimension_numbers = #tpu.dot_dimension_numbers<[1], [0], [0], [1], [0, 0, 1, 1], [], []>} : vector<256x128xf32>, vector<128x256xf32>, vector<256x256xf32> -> vector<256x256xf32>
    %cst_9 = arith.constant 4.000000e+00 : f32
    %17 = vector.broadcast %cst_9 : f32 to vector<256x256xf32>
    %18 = arith.mulf %17, %16 : vector<256x256xf32>
    %cst_10 = arith.constant 0.000000e+00 : f32
    %cst_11 = arith.constant 4.000000e+00 : f32
    %19 = vector.broadcast %cst_10 : f32 to vector<256x256xf32>
    %20 = arith.maximumf %19, %18 : vector<256x256xf32>
    %21 = vector.broadcast %cst_11 : f32 to vector<256x256xf32>
    %22 = arith.minimumf %21, %20 : vector<256x256xf32>
    %cst_12 = arith.constant 5.000000e-01 : f32
    %23 = vector.broadcast %cst_12 : f32 to vector<256x256xf32>
    %24 = arith.addf %22, %23 : vector<256x256xf32>
    %25 = math.floor %24 : vector<256x256xf32>
    %cst_13 = arith.constant 2.500000e-01 : f32
    %26 = vector.broadcast %cst_13 : f32 to vector<256x256xf32>
    %27 = arith.mulf %25, %26 : vector<256x256xf32>
    %28 = vector.extract_strided_slice %27 {offsets = [0, 0], sizes = [256, 128], strides = [1, 1]} : vector<256x256xf32> to vector<256x128xf32>
    %29 = arith.truncf %28 : vector<256x128xf32> to vector<256x128xbf16>
    %30 = vector.extract_strided_slice %27 {offsets = [0, 128], sizes = [256, 128], strides = [1, 1]} : vector<256x256xf32> to vector<256x128xf32>
    %31 = arith.truncf %30 : vector<256x128xf32> to vector<256x128xbf16>
    %c0_14 = arith.constant 0 : index
    %c0_15 = arith.constant 0 : index
    %c0_16 = arith.constant 0 : index
    %32 = vector.load %arg4[%c0_14, %c0_15, %c0_16] : memref<1x128x128xf32, #tpu.memory_space<vmem>>, vector<1x128x128xf32>
    %33 = vector.shape_cast %32 : vector<1x128x128xf32> to vector<128x128xf32>
    %cst_17 = arith.constant dense<0.000000e+00> : vector<128x128xf32>
    %34 = tpu.matmul %29, %31, %cst_17 {dimension_numbers = #tpu.dot_dimension_numbers<[0], [0], [1], [1], [0, 1, 1, 1], [], []>} : vector<256x128xbf16>, vector<256x128xbf16>, vector<128x128xf32> -> vector<128x128xf32>
    %35 = arith.addf %33, %34 : vector<128x128xf32>
    %c0_18 = arith.constant 0 : index
    %c0_19 = arith.constant 0 : index
    %c0_20 = arith.constant 0 : index
    %36 = vector.load %arg4[%c0_18, %c0_19, %c0_20] : memref<1x128x128xf32, #tpu.memory_space<vmem>>, vector<1x128x128xf32>
    %37 = vector.shape_cast %36 : vector<1x128x128xf32> to vector<128x128xf32>
    %38 = vector.shape_cast %35 : vector<128x128xf32> to vector<1x128x128xf32>
    tpu.vector_store %arg4[%c0_18, %c0_19, %c0_20], %38 {strides = array<i32>} : memref<1x128x128xf32, #tpu.memory_space<vmem>>, vector<1x128x128xf32>,
    return
  }
  func.func @transform_0(%arg0: i32, %arg1: i32) -> (i32, i32) {
    %c1_i32 = arith.constant 1 : i32
    %0 = arith.muli %arg0, %c1_i32 : i32
    %1 = arith.addi %0, %arg1 : i32
    %c0_i32 = arith.constant 0 : i32
    %c0_i32_0 = arith.constant 0 : i32
    return %1, %c0_i32 : i32, i32
  }
  func.func @transform_1(%arg0: i32, %arg1: i32) -> (i32, i32) {
    %c0_i32 = arith.constant 0 : i32
    %c0_i32_0 = arith.constant 0 : i32
    %c0_i32_1 = arith.constant 0 : i32
    return %c0_i32, %c0_i32_0 : i32, i32
  }
  func.func @transform_2(%arg0: i32, %arg1: i32) -> (i32, i32, i32) {
    %c0_i32 = arith.constant 0 : i32
    %c0_i32_0 = arith.constant 0 : i32
    %c0_i32_1 = arith.constant 0 : i32
    return %arg0, %c0_i32, %c0_i32_0 : i32, i32, i32
  }
}

module attributes {stable_mosaic.version = 11 : i64} {
  func.func @_attn_out_kernel(%arg0: i32, %arg1: memref<256x128xf32, #tpu.memory_space<vmem>>, %arg2: memref<128x128xf32, #tpu.memory_space<vmem>>, %arg3: memref<128x128xbf16, #tpu.memory_space<vmem>>, %arg4: memref<128x128xbf16, #tpu.memory_space<vmem>>, %arg5: memref<256x128xf32, #tpu.memory_space<vmem>>) attributes {dimension_semantics = [#tpu.dimension_semantics<parallel>], iteration_bounds = array<i64: 1>, scalar_prefetch = 0 : i64, scratch_operands = 0 : i64, tpu.core_type = #tpu.core_type<tc>, window_params = [{transform_indices = @transform_0, window_bounds = array<i64: 256, 128>}, {pipeline_mode = #tpu.pipeline_mode<synchronous>, transform_indices = @transform_1, window_bounds = array<i64: 128, 128>}, {pipeline_mode = #tpu.pipeline_mode<synchronous>, transform_indices = @transform_2, window_bounds = array<i64: 128, 128>}, {pipeline_mode = #tpu.pipeline_mode<synchronous>, transform_indices = @transform_3, window_bounds = array<i64: 128, 128>}, {transform_indices = @transform_4, window_bounds = array<i64: 256, 128>}]} {
    %c0 = arith.constant 0 : index
    %c0_0 = arith.constant 0 : index
    %0 = vector.load %arg1[%c0, %c0_0] : memref<256x128xf32, #tpu.memory_space<vmem>>, vector<256x128xf32>
    %cst = arith.constant 4.000000e+00 : f32
    %1 = vector.broadcast %cst : f32 to vector<256x128xf32>
    %2 = arith.mulf %1, %0 : vector<256x128xf32>
    %cst_1 = arith.constant 0.000000e+00 : f32
    %cst_2 = arith.constant 4.000000e+00 : f32
    %3 = vector.broadcast %cst_1 : f32 to vector<256x128xf32>
    %4 = arith.maximumf %3, %2 : vector<256x128xf32>
    %5 = vector.broadcast %cst_2 : f32 to vector<256x128xf32>
    %6 = arith.minimumf %5, %4 : vector<256x128xf32>
    %cst_3 = arith.constant 5.000000e-01 : f32
    %7 = vector.broadcast %cst_3 : f32 to vector<256x128xf32>
    %8 = arith.addf %6, %7 : vector<256x128xf32>
    %9 = math.floor %8 : vector<256x128xf32>
    %cst_4 = arith.constant 2.500000e-01 : f32
    %10 = vector.broadcast %cst_4 : f32 to vector<256x128xf32>
    %11 = arith.mulf %9, %10 : vector<256x128xf32>
    %c0_5 = arith.constant 0 : index
    %c0_6 = arith.constant 0 : index
    %12 = vector.load %arg2[%c0_5, %c0_6] : memref<128x128xf32, #tpu.memory_space<vmem>>, vector<128x128xf32>
    %cst_7 = arith.constant dense<0.000000e+00> : vector<256x128xf32>
    %13 = tpu.matmul %11, %12, %cst_7 {dimension_numbers = #tpu.dot_dimension_numbers<[1], [0], [0], [1], [0, 0, 1, 1], [], []>} : vector<256x128xf32>, vector<128x128xf32>, vector<256x128xf32> -> vector<256x128xf32>
    %cst_8 = arith.constant 4.000000e+00 : f32
    %14 = vector.broadcast %cst_8 : f32 to vector<256x128xf32>
    %15 = arith.mulf %14, %13 : vector<256x128xf32>
    %cst_9 = arith.constant 0.000000e+00 : f32
    %cst_10 = arith.constant 4.000000e+00 : f32
    %16 = vector.broadcast %cst_9 : f32 to vector<256x128xf32>
    %17 = arith.maximumf %16, %15 : vector<256x128xf32>
    %18 = vector.broadcast %cst_10 : f32 to vector<256x128xf32>
    %19 = arith.minimumf %18, %17 : vector<256x128xf32>
    %cst_11 = arith.constant 5.000000e-01 : f32
    %20 = vector.broadcast %cst_11 : f32 to vector<256x128xf32>
    %21 = arith.addf %19, %20 : vector<256x128xf32>
    %22 = math.floor %21 : vector<256x128xf32>
    %cst_12 = arith.constant 2.500000e-01 : f32
    %23 = vector.broadcast %cst_12 : f32 to vector<256x128xf32>
    %24 = arith.mulf %22, %23 : vector<256x128xf32>
    %25 = arith.truncf %24 : vector<256x128xf32> to vector<256x128xbf16>
    %c0_13 = arith.constant 0 : index
    %c0_14 = arith.constant 0 : index
    %26 = vector.load %arg3[%c0_13, %c0_14] : memref<128x128xbf16, #tpu.memory_space<vmem>>, vector<128x128xbf16>
    %cst_15 = arith.constant dense<0.000000e+00> : vector<256x128xf32>
    %27 = tpu.matmul %25, %26, %cst_15 {dimension_numbers = #tpu.dot_dimension_numbers<[1], [0], [0], [1], [0, 0, 1, 1], [], []>} : vector<256x128xbf16>, vector<128x128xbf16>, vector<256x128xf32> -> vector<256x128xf32>
    %c0_16 = arith.constant 0 : index
    %c0_17 = arith.constant 0 : index
    %28 = vector.load %arg4[%c0_16, %c0_17] : memref<128x128xbf16, #tpu.memory_space<vmem>>, vector<128x128xbf16>
    %cst_18 = arith.constant dense<0.000000e+00> : vector<256x128xf32>
    %29 = tpu.matmul %25, %28, %cst_18 {dimension_numbers = #tpu.dot_dimension_numbers<[1], [0], [0], [1], [0, 0, 1, 1], [], []>} : vector<256x128xbf16>, vector<128x128xbf16>, vector<256x128xf32> -> vector<256x128xf32>
    %30 = arith.addf %27, %29 : vector<256x128xf32>
    %c0_19 = arith.constant 0 : index
    %c0_20 = arith.constant 0 : index
    %31 = vector.load %arg5[%c0_19, %c0_20] : memref<256x128xf32, #tpu.memory_space<vmem>>, vector<256x128xf32>
    tpu.vector_store %arg5[%c0_19, %c0_20], %30 {strides = array<i32>} : memref<256x128xf32, #tpu.memory_space<vmem>>, vector<256x128xf32>,
    return
  }
  func.func @transform_0(%arg0: i32) -> (i32, i32) {
    %c0_i32 = arith.constant 0 : i32
    %c0_i32_0 = arith.constant 0 : i32
    return %arg0, %c0_i32 : i32, i32
  }
  func.func @transform_1(%arg0: i32) -> (i32, i32) {
    %c0_i32 = arith.constant 0 : i32
    %c0_i32_0 = arith.constant 0 : i32
    %c0_i32_1 = arith.constant 0 : i32
    return %c0_i32, %c0_i32_0 : i32, i32
  }
  func.func @transform_2(%arg0: i32) -> (i32, i32) {
    %c0_i32 = arith.constant 0 : i32
    %c0_i32_0 = arith.constant 0 : i32
    %c0_i32_1 = arith.constant 0 : i32
    return %c0_i32, %c0_i32_0 : i32, i32
  }
  func.func @transform_3(%arg0: i32) -> (i32, i32) {
    %c0_i32 = arith.constant 0 : i32
    %c0_i32_0 = arith.constant 0 : i32
    %c0_i32_1 = arith.constant 0 : i32
    return %c0_i32, %c0_i32_0 : i32, i32
  }
  func.func @transform_4(%arg0: i32) -> (i32, i32) {
    %c0_i32 = arith.constant 0 : i32
    %c0_i32_0 = arith.constant 0 : i32
    return %arg0, %c0_i32 : i32, i32
  }
}

</mosaic_0001>

<bundles_post_ra>
// kernel: spike_attention_forward.2
= control target key start
LH: loop header
LB: loop body
LE: loop exit
PB: predicated region body
PF: predicated region fallthrough
CT: control target
= control target key end

     0   :  { %v1283_v3 = vmov 0.0   ;;  %s1712_s1 = inlined_call_operand.vmem [shape: f32[128,256], index: 1, kind: input, shape index: {}]   ;;  %s1713_s0 = inlined_call_operand.vmem [shape: f32[256,128], index: 0, kind: input, shape index: {}]   ;;  %s1714_s2 = inlined_call_operand.vmem [shape: f32[1,128,128], index: 2, kind: output, shape index: {}]  }
   0x1   :  { %v279_v0 = vld [vmem:[%s1712_s1 + $0x8] sm:$0xff]  ;;  %v281_v1 = vld [vmem:[%s1712_s1 + $0x18] sm:$0xff]  ;;  %v278_v2 = vld [vmem:[%s1712_s1] sm:$0xff]  ;;  %374 = vmatprep.mubr.f32.mxu0 %v1283_v3  ;;  %518 = vmatprep.mubr.f32.mxu1 %v1283_v3 }
   0x2   :  { %v1234_v4 = vpack.c.bf16 %v281_v1, %v279_v0  ;;  %v280_v5 = vld [vmem:[%s1712_s1 + $0x10] sm:$0xff]  ;;  %v283_v6 = vld [vmem:[%s1712_s1 + $0x28] sm:$0xff]  ;;  %v285_v7 = vld [vmem:[%s1712_s1 + $0x38] sm:$0xff] }
   0x3   :  { %v1236_v8 = vpack.c.bf16 %v280_v5, %v278_v2  ;;  %v1238_v9 = vpack.c.bf16 %v285_v7, %v283_v6  ;;  %v282_v10 = vld [vmem:[%s1712_s1 + $0x20] sm:$0xff]  ;;  %v284_v11 = vld [vmem:[%s1712_s1 + $0x30] sm:$0xff]  ;;  %v287_v12 = vld [vmem:[%s1712_s1 + $0x48] sm:$0xff] }
   0x4   :  { %1235 = vmatprep.subr.bf16.mxu0 %v1234_v4  ;;  %v289_v13 = vld [vmem:[%s1712_s1 + $0x58] sm:$0xff]  ;;  %1266 = vmatprep.subr.bf16.mxu1 %v1234_v4  ;;  %v1240_v14 = vpack.c.bf16 %v284_v11, %v282_v10  ;;  %v286_v16 = vld [vmem:[%s1712_s1 + $0x40] sm:$0xff]  ;;  %v288_v17 = vld [vmem:[%s1712_s1 + $0x50] sm:$0xff] }
   0x5   :  { %1237 = vmatpush1.bf16.msra.mxu0 %v1236_v8  ;;  %1274 = vmatpush1.bf16.msra.mxu1 %v1236_v8  ;;  %v1242_v15 = vpack.c.bf16 %v289_v13, %v287_v12  ;;  %v291_v18 = vld [vmem:[%s1712_s1 + $0x68] sm:$0xff]  ;;  %v293_v19 = vld [vmem:[%s1712_s1 + $0x78] sm:$0xff]  ;;  %v1244_v20 = vpack.c.bf16 %v288_v17, %v286_v16  ;;  %v290_v22 = vld [vmem:[%s1712_s1 + $0x60] sm:$0xff] }
   0x6   :  { %1239 = vmatprep.subr.bf16.mxu0 %v1238_v9  ;;  %1267 = vmatprep.subr.bf16.mxu1 %v1238_v9  ;;  %v1246_v21 = vpack.c.bf16 %v293_v19, %v291_v18  ;;  %v292_v23 = vld [vmem:[%s1712_s1 + $0x70] sm:$0xff]  ;;  %v295_v24 = vld [vmem:[%s1712_s1 + $0x88] sm:$0xff]  ;;  %v297_v25 = vld [vmem:[%s1712_s1 + $0x98] sm:$0xff] }
   0x7   :  { %v54_v26 = vld [vmem:[%s1713_s0] sm:$0xff]  ;;  %v1248_v28 = vpack.c.bf16 %v292_v23, %v290_v22  ;;  %v55_v29 = vld [vmem:[%s1713_s0 + $0x8] sm:$0xff]  ;;  %v1250_v30 = vpack.c.bf16 %v297_v25, %v295_v24  ;;  %v296_v32 = vld [vmem:[%s1712_s1 + $0x90] sm:$0xff] }
   0x8   :  { %v86_v27 = vmul.f32 4.0, %v54_v26  ;;  %v294_v31 = vld [vmem:[%s1712_s1 + $0x80] sm:$0xff]  ;;  %v299_v33 = vld [vmem:[%s1712_s1 + $0xa8] sm:$0xff]  ;;  %v301_v34 = vld [vmem:[%s1712_s1 + $0xb8] sm:$0xff]  ;;  %v87_v36 = vmul.f32 4.0, %v55_v29 }
   0x9   :  { %1241 = vmatpush1.bf16.msra.mxu0 %v1240_v14  ;;  %1275 = vmatpush1.bf16.msra.mxu1 %v1240_v14  ;;  %v1252_v37 = vpack.c.bf16 %v296_v32, %v294_v31  ;;  %v56_v38 = vld [vmem:[%s1713_s0 + $0x10] sm:$0xff]  ;;  %v1254_v39 = vpack.c.bf16 %v301_v34, %v299_v33  ;;  %v298_v40 = vld [vmem:[%s1712_s1 + $0xa0] sm:$0xff]  ;;  %v303_v42 = vld [vmem:[%s1712_s1 + $0xc8] sm:$0xff] }
   0xa   :  { %1243 = vmatprep.subr.bf16.mxu0 %v1242_v15  ;;  %1268 = vmatprep.subr.bf16.mxu1 %v1242_v15  ;;  %v118_v35 = vmax.f32 %v86_v27, 0.0  ;;  %v300_v41 = vld [vmem:[%s1712_s1 + $0xb0] sm:$0xff]  ;;  %v305_v43 = vld [vmem:[%s1712_s1 + $0xd8] sm:$0xff]  ;;  %v119_v45 = vmax.f32 %v87_v36, 0.0  ;;  %v88_v46 = vmul.f32 4.0, %v56_v38  ;;  %v302_v50 = vld [vmem:[%s1712_s1 + $0xc0] sm:$0xff] }
   0xb   :  { %v1256_v47 = vpack.c.bf16 %v300_v41, %v298_v40  ;;  %v57_v48 = vld [vmem:[%s1713_s0 + $0x18] sm:$0xff]  ;;  %v1258_v49 = vpack.c.bf16 %v305_v43, %v303_v42  ;;  %v304_v51 = vld [vmem:[%s1712_s1 + $0xd0] sm:$0xff]  ;;  %v307_v52 = vld [vmem:[%s1712_s1 + $0xe8] sm:$0xff] }
   0xc   :  { %v150_v44 = vmin.f32 %v118_v35, 4.0  ;;  %v309_v53 = vld [vmem:[%s1712_s1 + $0xf8] sm:$0xff]  ;;  %v151_v55 = vmin.f32 %v119_v45, 4.0  ;;  %v120_v56 = vmax.f32 %v88_v46, 0.0  ;;  %v89_v57 = vmul.f32 4.0, %v57_v48  ;;  %v58_v58 = vld [vmem:[%s1713_s0 + $0x20] sm:$0xff] }
   0xd   :  { %1245 = vmatpush1.bf16.msra.mxu0 %v1244_v20  ;;  %1276 = vmatpush1.bf16.msra.mxu1 %v1244_v20  ;;  %v1260_v59 = vpack.c.bf16 %v304_v51, %v302_v50  ;;  %v1262_v60 = vpack.c.bf16 %v309_v53, %v307_v52  ;;  %v306_v61 = vld [vmem:[%s1712_s1 + $0xe0] sm:$0xff]  ;;  %v308_v62 = vld [vmem:[%s1712_s1 + $0xf0] sm:$0xff]  ;;  %v90_v63 = vmul.f32 4.0, %v58_v58  ;;  %v59_v5 = vld [vmem:[%s1713_s0 + $0x28] sm:$0xff] }
   0xe   :  { %1247 = vmatprep.subr.bf16.mxu0 %v1246_v21  ;;  %1269 = vmatprep.subr.bf16.mxu1 %v1246_v21  ;;  %v182_v54 = vadd.f32 0.5, %v150_v44  ;;  %v183_v1 = vadd.f32 0.5, %v151_v55  ;;  %v152_v2 = vmin.f32 %v120_v56, 4.0  ;;  %v121_v4 = vmax.f32 %v89_v57, 0.0  ;;  %v60_v9 = vld [vmem:[%s1713_s0 + $0x30] sm:$0xff]  ;;  %v78_v15 = vld [vmem:[%s1713_s0 + $0xc0] sm:$0xff] }
   0xf   :  { %v1264_v6 = vpack.c.bf16 %v308_v62, %v306_v61  ;;  %v122_v7 = vmax.f32 %v90_v63, 0.0  ;;  %v91_v8 = vmul.f32 4.0, %v59_v5  ;;  %v92_v14 = vmul.f32 4.0, %v60_v9  ;;  %v61_v17 = vld [vmem:[%s1713_s0 + $0x38] sm:$0xff]  ;;  %v79_v18 = vld [vmem:[%s1713_s0 + $0xc8] sm:$0xff]  ;;  %v80_v23 = vld [vmem:[%s1713_s0 + $0xd0] sm:$0xff] }
  0x10   :  { %v214_v0 = vfloor.f32 %v182_v54  ;;  %v215_v11 = vfloor.f32 %v183_v1  ;;  %v184_v12 = vadd.f32 0.5, %v152_v2  ;;  %v153_v13 = vmin.f32 %v121_v4, 4.0  ;;  %v62_v35 = vld [vmem:[%s1713_s0 + $0x40] sm:$0xff]  ;;  %v63_v48 = vld [vmem:[%s1713_s0 + $0x48] sm:$0xff]  ;;  %v81_v54 = vld [vmem:[%s1713_s0 + $0xd8] sm:$0xff] }
  0x11   :  { %1249 = vmatpush1.bf16.msra.mxu0 %v1248_v28  ;;  %1277 = vmatpush1.bf16.msra.mxu1 %v1248_v28  ;;  %v123_v16 = vmax.f32 %v91_v8, 0.0  ;;  %v154_v22 = vmin.f32 %v122_v7, 4.0  ;;  %v110_v24 = vmul.f32 4.0, %v78_v15  ;;  %v124_v25 = vmax.f32 %v92_v14, 0.0  ;;  %v82_v55 = vld [vmem:[%s1713_s0 + $0xe0] sm:$0xff]  ;;  %v83_v58 = vld [vmem:[%s1713_s0 + $0xe8] sm:$0xff] }
  0x12   :  { %1251 = vmatprep.subr.bf16.mxu0 %v1250_v30  ;;  %1270 = vmatprep.subr.bf16.mxu1 %v1250_v30  ;;  %v246_v10 = vmul.f32 0.25, %v214_v0  ;;  %v247_v19 = vmul.f32 0.25, %v215_v11  ;;  %v216_v20 = vfloor.f32 %v184_v12  ;;  %v185_v21 = vadd.f32 0.5, %v153_v13  ;;  %v64_v63 = vld [vmem:[%s1713_s0 + $0x50] sm:$0xff]  ;;  %v85_v5 = vld [vmem:[%s1713_s0 + $0xf8] sm:$0xff] }
  0x13   :  { %v93_v26 = vmul.f32 4.0, %v61_v17  ;;  %v111_v27 = vmul.f32 4.0, %v79_v18  ;;  %v155_v28 = vmin.f32 %v123_v16, 4.0  ;;  %v142_v29 = vmax.f32 %v110_v24, 0.0  ;;  %v65_v16 = vld [vmem:[%s1713_s0 + $0x58] sm:$0xff] }
  0x14   :  { %v112_v30 = vmul.f32 4.0, %v80_v23  ;;  %v248_v31 = vmul.f32 0.25, %v216_v20  ;;  %v217_v32 = vfloor.f32 %v185_v21  ;;  %v186_v33 = vadd.f32 0.5, %v154_v22 }
  0x15   :  { %1253 = vmatpush1.bf16.msra.mxu0 %v1252_v37  ;;  %1278 = vmatpush1.bf16.msra.mxu1 %v1252_v37  ;;  %v143_v34 = vmax.f32 %v111_v27, 0.0  ;;  %v174_v36 = vmin.f32 %v142_v29, 4.0  ;;  %v156_v38 = vmin.f32 %v124_v25, 4.0  ;;  %v187_v41 = vadd.f32 0.5, %v155_v28 }
  0x16   :  { %1255 = vmatprep.subr.bf16.mxu0 %v1254_v39  ;;  %1271 = vmatprep.subr.bf16.mxu1 %v1254_v39  ;;  %v144_v37 = vmax.f32 %v112_v30, 0.0  ;;  %v125_v39 = vmax.f32 %v93_v26, 0.0  ;;  %v249_v44 = vmul.f32 0.25, %v217_v32  ;;  %v218_v45 = vfloor.f32 %v186_v33  ;;  %v66_v32 = vld [vmem:[%s1713_s0 + $0x60] sm:$0xff] }
  0x17   :  { %v175_v40 = vmin.f32 %v143_v34, 4.0  ;;  %v206_v42 = vadd.f32 0.5, %v174_v36  ;;  %v94_v46 = vmul.f32 4.0, %v62_v35  ;;  %v188_v51 = vadd.f32 0.5, %v156_v38 }
  0x18   :  { %v176_v43 = vmin.f32 %v144_v37, 4.0  ;;  %v157_v52 = vmin.f32 %v125_v39, 4.0  ;;  %v219_v56 = vfloor.f32 %v187_v41  ;;  %v95_v62 = vmul.f32 4.0, %v63_v48 }
  0x19   :  { %1257 = vmatpush1.bf16.msra.mxu0 %v1256_v47  ;;  %1279 = vmatpush1.bf16.msra.mxu1 %v1256_v47  ;;  %v207_v47 = vadd.f32 0.5, %v175_v40  ;;  %v126_v61 = vmax.f32 %v94_v46, 0.0  ;;  %v113_v2 = vmul.f32 4.0, %v81_v54  ;;  %v114_v4 = vmul.f32 4.0, %v82_v55 }
  0x1a   :  { %1259 = vmatprep.subr.bf16.mxu0 %v1258_v49  ;;  %1272 = vmatprep.subr.bf16.mxu1 %v1258_v49  ;;  %v238_v49 = vfloor.f32 %v206_v42  ;;  %v208_v50 = vadd.f32 0.5, %v176_v43  ;;  %v189_v7 = vadd.f32 0.5, %v157_v52  ;;  %v115_v8 = vmul.f32 4.0, %v83_v58 }
  0x1b   :  { %v239_v53 = vfloor.f32 %v207_v47  ;;  %v96_v11 = vmul.f32 4.0, %v64_v63  ;;  %v145_v12 = vmax.f32 %v113_v2, 0.0  ;;  %v146_v13 = vmax.f32 %v114_v4, 0.0  ;;  %v69_v2 = vld [vmem:[%s1713_s0 + $0x78] sm:$0xff] }
  0x1c   :  { %v270_v57 = vmul.f32 0.25, %v238_v49  ;;  %v240_v1 = vfloor.f32 %v208_v50  ;;  %v158_v14 = vmin.f32 %v126_v61, 4.0  ;;  %v127_v15 = vmax.f32 %v95_v62, 0.0 }
  0x1d   :  { %1261 = vmatpush1.bf16.msra.mxu0 %v1260_v59  ;;  %1280 = vmatpush1.bf16.msra.mxu1 %v1260_v59  ;;  %v84_v59 = vld [vmem:[%s1713_s0 + $0xf0] sm:$0xff]  ;;  %v271_v0 = vmul.f32 0.25, %v239_v53  ;;  %v147_v17 = vmax.f32 %v115_v8, 0.0  ;;  %v117_v18 = vmul.f32 4.0, %v85_v5  ;;  %v177_v20 = vmin.f32 %v145_v12, 4.0  ;;  %v70_v12 = vld [vmem:[%s1713_s0 + $0x80] sm:$0xff] }
  0x1e   :  { %1263 = vmatprep.subr.bf16.mxu0 %v1262_v60  ;;  %1273 = vmatprep.subr.bf16.mxu1 %v1262_v60  ;;  %v250_v60 = vmul.f32 0.25, %v218_v45  ;;  %v116_v9 = vmul.f32 4.0, %v84_v59  ;;  %v178_v21 = vmin.f32 %v146_v13, 4.0  ;;  %v221_v23 = vfloor.f32 %v189_v7  ;;  %v67_v45 = vld [vmem:[%s1713_s0 + $0x68] sm:$0xff] }
  0x1f   :  { %v179_v24 = vmin.f32 %v147_v17, 4.0  ;;  %v97_v26 = vmul.f32 4.0, %v65_v16  ;;  %v209_v27 = vadd.f32 0.5, %v177_v20  ;;  %v190_v29 = vadd.f32 0.5, %v158_v14  ;;  %v71_v20 = vld [vmem:[%s1713_s0 + $0x88] sm:$0xff] }
  0x20   :  { %v148_v22 = vmax.f32 %v116_v9, 0.0  ;;  %v210_v28 = vadd.f32 0.5, %v178_v21  ;;  %v159_v30 = vmin.f32 %v127_v15, 4.0  ;;  %v149_v33 = vmax.f32 %v117_v18, 0.0 }
  0x21   :  { %1265 = vmatpush1.bf16.msra.mxu0 %v1264_v6  ;;  %1281 = vmatpush1.bf16.msra.mxu1 %v1264_v6  ;;  %v220_v6 = vfloor.f32 %v188_v51  ;;  %v241_v34 = vfloor.f32 %v209_v27  ;;  %v211_v36 = vadd.f32 0.5, %v179_v24  ;;  %v253_v38 = vmul.f32 0.25, %v221_v23  ;;  %v72_v27 = vld [vmem:[%s1713_s0 + $0x90] sm:$0xff] }
  0x22   :  { %v242_v35 = vfloor.f32 %v210_v28  ;;  %v180_v37 = vmin.f32 %v148_v22, 4.0  ;;  %v98_v39 = vmul.f32 4.0, %v66_v32  ;;  %v222_v41 = vfloor.f32 %v190_v29 }
  0x23   :  { %v252_v25 = vmul.f32 0.25, %v220_v6  ;;  %v273_v40 = vmul.f32 0.25, %v241_v34  ;;  %v191_v42 = vadd.f32 0.5, %v159_v30  ;;  %v243_v47 = vfloor.f32 %v211_v36  ;;  %v73_v34 = vld [vmem:[%s1713_s0 + $0x98] sm:$0xff] }
  0x24   :  { %375 = vmatmul.mubr.f32.vlgmr.msra.gmra.mrb[0].mxu0 %v246_v10  ;;  %519 = vmatmul.mubr.f32.vlgmr.msra.gmra.mrb[0].mxu1 %v270_v57  ;;  %v251_v10 = vmul.f32 0.25, %v219_v56  ;;  %v274_v46 = vmul.f32 0.25, %v242_v35  ;;  %v212_v48 = vadd.f32 0.5, %v180_v37  ;;  %v181_v49 = vmin.f32 %v149_v33, 4.0  ;;  %v68_v56 = vld [vmem:[%s1713_s0 + $0x70] sm:$0xff] }
  0x25   :  { %380 = vmatprep.mubr.f32.mxu0 %v1283_v3  ;;  %524 = vmatprep.mubr.f32.mxu1 %v1283_v3  ;;  %v130_v50 = vmax.f32 %v98_v39, 0.0  ;;  %v99_v51 = vmul.f32 4.0, %v67_v45  ;;  %v254_v52 = vmul.f32 0.25, %v222_v41  ;;  %v223_v53 = vfloor.f32 %v191_v42  ;;  %v74_v41 = vld [vmem:[%s1713_s0 + $0xa0] sm:$0xff] }
  0x26   :  { %v275_v57 = vmul.f32 0.25, %v243_v47  ;;  %v244_v58 = vfloor.f32 %v212_v48  ;;  %v213_v59 = vadd.f32 0.5, %v181_v49  ;;  %v100_v61 = vmul.f32 4.0, %v68_v56  ;;  %v75_v48 = vld [vmem:[%s1713_s0 + $0xa8] sm:$0xff] }
  0x27   :  { %v255_v62 = vmul.f32 0.25, %v223_v53  ;;  %v101_v7 = vmul.f32 4.0, %v69_v2  ;;  %v104_v33 = vmul.f32 4.0, %v72_v27  ;;  %v105_v36 = vmul.f32 4.0, %v73_v34 }
  0x28   :  { %381 = vmatmul.mubr.f32.gmra.mrb[2].mxu0 %v247_v19  ;;  %525 = vmatmul.mubr.f32.gmra.mrb[2].mxu1 %v271_v0  ;;  %v272_v19 = vmul.f32 0.25, %v240_v1  ;;  %v162_v1 = vmin.f32 %v130_v50, 4.0  ;;  %v276_v4 = vmul.f32 0.25, %v244_v58  ;;  %v245_v5 = vfloor.f32 %v213_v59 }
  0x29   :  { %386 = vmatprep.mubr.f32.mxu0 %v1283_v3  ;;  %530 = vmatprep.mubr.f32.mxu1 %v1283_v3  ;;  %v132_v6 = vmax.f32 %v100_v61, 0.0  ;;  %v133_v15 = vmax.f32 %v101_v7, 0.0  ;;  %v137_v42 = vmax.f32 %v105_v36, 0.0 }
  0x2a   :  { %v277_v13 = vmul.f32 0.25, %v245_v5 }
  0x2b   :  { %v164_v14 = vmin.f32 %v132_v6, 4.0  ;;  %v165_v22 = vmin.f32 %v133_v15, 4.0  ;;  %v169_v49 = vmin.f32 %v137_v42, 4.0 }
  0x2c   :  { %387 = vmatmul.mubr.f32.gmra.mrb[4].mxu0 %v248_v31  ;;  %v128_v31 = vmax.f32 %v96_v11, 0.0  ;;  %531 = vmatmul.mubr.f32.gmra.mrb[4].mxu1 %v272_v19  ;;  %v102_v19 = vmul.f32 4.0, %v70_v12 }
  0x2d   :  { %392 = vmatprep.mubr.f32.mxu0 %v1283_v3  ;;  %536 = vmatprep.mubr.f32.mxu1 %v1283_v3  ;;  %v196_v21 = vadd.f32 0.5, %v164_v14  ;;  %v197_v29 = vadd.f32 0.5, %v165_v22  ;;  %v201_v56 = vadd.f32 0.5, %v169_v49 }
  0x2e   :  { %v160_v43 = vmin.f32 %v128_v31, 4.0 }
  0x2f   :  { %v228_v28 = vfloor.f32 %v196_v21  ;;  %v229_v35 = vfloor.f32 %v197_v29 }
  0x30   :  { %393 = vmatmul.mubr.f32.gmra.mrb[6].mxu0 %v249_v44  ;;  %v129_v44 = vmax.f32 %v97_v26, 0.0  ;;  %537 = vmatmul.mubr.f32.gmra.mrb[6].mxu1 %v273_v40  ;;  %v192_v54 = vadd.f32 0.5, %v160_v43  ;;  %v103_v26 = vmul.f32 4.0, %v71_v20  ;;  %v136_v40 = vmax.f32 %v104_v33, 0.0 }
  0x31   :  { %398 = vmatprep.mubr.f32.mxu0 %v1283_v3  ;;  %542 = vmatprep.mubr.f32.mxu1 %v1283_v3  ;;  %v260_v37 = vmul.f32 0.25, %v228_v28  ;;  %v106_v43 = vmul.f32 4.0, %v74_v41 }
  0x32   :  { %v161_v55 = vmin.f32 %v129_v44, 4.0  ;;  %v224_v63 = vfloor.f32 %v192_v54  ;;  %v135_v32 = vmax.f32 %v103_v26, 0.0  ;;  %v261_v44 = vmul.f32 0.25, %v229_v35 }
  0x33   :  { %v168_v47 = vmin.f32 %v136_v40, 4.0  ;;  %v138_v50 = vmax.f32 %v106_v43, 0.0  ;;  %v107_v54 = vmul.f32 4.0, %v75_v48 }
  0x34   :  { %399 = vmatmul.mubr.f32.gmra.mrb[8].mxu0 %v250_v60  ;;  %543 = vmatmul.mubr.f32.gmra.mrb[8].mxu1 %v274_v46  ;;  %v131_v60 = vmax.f32 %v99_v51, 0.0  ;;  %v193_v0 = vadd.f32 0.5, %v161_v55  ;;  %v256_v8 = vmul.f32 0.25, %v224_v63  ;;  %v167_v39 = vmin.f32 %v135_v32, 4.0  ;;  %v76_v55 = vld [vmem:[%s1713_s0 + $0xb0] sm:$0xff] }
  0x35   :  { %404 = vmatprep.mubr.f32.mxu0 %v1283_v3  ;;  %548 = vmatprep.mubr.f32.mxu1 %v1283_v3  ;;  %v200_v53 = vadd.f32 0.5, %v168_v47  ;;  %v108_v61 = vmul.f32 4.0, %v76_v55  ;;  %v233_v63 = vfloor.f32 %v201_v56 }
  0x36   :  { %v225_v9 = vfloor.f32 %v193_v0  ;;  %v163_v11 = vmin.f32 %v131_v60, 4.0  ;;  %v199_v46 = vadd.f32 0.5, %v167_v39  ;;  %v139_v60 = vmax.f32 %v107_v54, 0.0 }
  0x37   :  { %v232_v59 = vfloor.f32 %v200_v53  ;;  %v265_v7 = vmul.f32 0.25, %v233_v63 }
  0x38   :  { %405 = vmatmul.mubr.f32.gmra.mrb[10].mxu0 %v251_v10  ;;  %549 = vmatmul.mubr.f32.gmra.mrb[10].mxu1 %v275_v57  ;;  %v194_v10 = vadd.f32 0.5, %v162_v1  ;;  %v257_v16 = vmul.f32 0.25, %v225_v9  ;;  %v195_v18 = vadd.f32 0.5, %v163_v11  ;;  %v170_v57 = vmin.f32 %v138_v50, 4.0 }
  0x39   :  { %410 = vmatprep.mubr.f32.mxu0 %v1283_v3  ;;  %554 = vmatprep.mubr.f32.mxu1 %v1283_v3  ;;  %v264_v1 = vmul.f32 0.25, %v232_v59  ;;  %v171_v2 = vmin.f32 %v139_v60, 4.0 }
  0x3a   :  { %v226_v17 = vfloor.f32 %v194_v10  ;;  %v227_v24 = vfloor.f32 %v195_v18  ;;  %v202_v0 = vadd.f32 0.5, %v170_v57 }
  0x3c   :  { %411 = vmatmul.mubr.f32.gmra.mrb[12].mxu0 %v252_v25  ;;  %555 = vmatmul.mubr.f32.gmra.mrb[12].mxu1 %v276_v4  ;;  %v258_v23 = vmul.f32 0.25, %v226_v17  ;;  %v134_v25 = vmax.f32 %v102_v19, 0.0  ;;  %v259_v30 = vmul.f32 0.25, %v227_v24  ;;  %v140_v4 = vmax.f32 %v108_v61, 0.0 }
  0x3d   :  { %416 = vmatprep.mubr.f32.mxu0 %v1283_v3  ;;  %560 = vmatprep.mubr.f32.mxu1 %v1283_v3  ;;  %v234_v6 = vfloor.f32 %v202_v0 }
  0x3e   :  { %v166_v31 = vmin.f32 %v134_v25, 4.0  ;;  %v172_v9 = vmin.f32 %v140_v4, 4.0 }
  0x3f   :  { %v266_v11 = vmul.f32 0.25, %v234_v6 }
  0x40   :  { %417 = vmatmul.mubr.f32.gmra.mrb[14].mxu0 %v253_v38  ;;  %561 = vmatmul.mubr.f32.gmra.mrb[14].mxu1 %v277_v13  ;;  %v198_v38 = vadd.f32 0.5, %v166_v31  ;;  %v204_v13 = vadd.f32 0.5, %v172_v9 }
  0x41   :  { %422 = vmatprep.mubr.f32.mxu0 %v1283_v3 }
  0x42   :  { %v230_v45 = vfloor.f32 %v198_v38 }
  0x44   :  { %423 = vmatmul.mubr.f32.gmra.mrb[16].mxu0 %v254_v52  ;;  %v262_v51 = vmul.f32 0.25, %v230_v45  ;;  %v231_v52 = vfloor.f32 %v199_v46 }
  0x45   :  { %428 = vmatprep.mubr.f32.mxu0 %v1283_v3 }
  0x46   :  { %v263_v58 = vmul.f32 0.25, %v231_v52 }
  0x48   :  { %429 = vmatmul.mubr.f32.gmra.mrb[18].mxu0 %v255_v62  ;;  %v77_v62 = vld [vmem:[%s1713_s0 + $0xb8] sm:$0xff] }
  0x49   :  { %434 = vmatprep.mubr.f32.mxu0 %v1283_v3  ;;  %v109_v5 = vmul.f32 4.0, %v77_v62 }
  0x4b   :  { %v141_v10 = vmax.f32 %v109_v5, 0.0 }
  0x4c   :  { %435 = vmatmul.mubr.f32.gmra.mrb[20].mxu0 %v256_v8  ;;  %v203_v8 = vadd.f32 0.5, %v171_v2 }
  0x4d   :  { %440 = vmatprep.mubr.f32.mxu0 %v1283_v3  ;;  %v173_v14 = vmin.f32 %v141_v10, 4.0 }
  0x4e   :  { %v235_v12 = vfloor.f32 %v203_v8 }
  0x4f   :  { %v205_v17 = vadd.f32 0.5, %v173_v14 }
  0x50   :  { %441 = vmatmul.mubr.f32.gmra.mrb[22].mxu0 %v257_v16  ;;  %v267_v15 = vmul.f32 0.25, %v235_v12  ;;  %v236_v16 = vfloor.f32 %v204_v13 }
  0x51   :  { %446 = vmatprep.mubr.f32.mxu0 %v1283_v3  ;;  %v237_v19 = vfloor.f32 %v205_v17 }
  0x52   :  { %v268_v18 = vmul.f32 0.25, %v236_v16 }
  0x53   :  { %v269_v20 = vmul.f32 0.25, %v237_v19 }
  0x54   :  { %447 = vmatmul.mubr.f32.gmra.mrb[24].mxu0 %v258_v23 }
  0x55   :  { %452 = vmatprep.mubr.f32.mxu0 %v1283_v3 }
  0x58   :  { %453 = vmatmul.mubr.f32.gmra.mrb[26].mxu0 %v259_v30 }
  0x59   :  { %458 = vmatprep.mubr.f32.mxu0 %v1283_v3 }
  0x5c   :  { %459 = vmatmul.mubr.f32.gmra.mrb[28].mxu0 %v260_v37 }
  0x5d   :  { %464 = vmatprep.mubr.f32.mxu0 %v1283_v3 }
  0x60   :  { %465 = vmatmul.mubr.f32.gmra.mrb[30].mxu0 %v261_v44 }
  0x61   :  { %470 = vmatprep.mubr.f32.mxu0 %v1283_v3 }
  0x64   :  { %471 = vmatmul.mubr.f32.gmra.mrb[32].mxu0 %v262_v51 }
  0x65   :  { %476 = vmatprep.mubr.f32.mxu0 %v1283_v3 }
  0x68   :  { %477 = vmatmul.mubr.f32.gmra.mrb[34].mxu0 %v263_v58 }
  0x69   :  { %482 = vmatprep.mubr.f32.mxu0 %v1283_v3 }
  0x6c   :  { %483 = vmatmul.mubr.f32.gmra.mrb[36].mxu0 %v264_v1 }
  0x6d   :  { %488 = vmatprep.mubr.f32.mxu0 %v1283_v3 }
  0x70   :  { %489 = vmatmul.mubr.f32.gmra.mrb[38].mxu0 %v265_v7 }
  0x71   :  { %494 = vmatprep.mubr.f32.mxu0 %v1283_v3 }
  0x74   :  { %495 = vmatmul.mubr.f32.gmra.mrb[40].mxu0 %v266_v11 }
  0x75   :  { %500 = vmatprep.mubr.f32.mxu0 %v1283_v3 }
  0x78   :  { %501 = vmatmul.mubr.f32.gmra.mrb[42].mxu0 %v267_v15 }
  0x79   :  { %506 = vmatprep.mubr.f32.mxu0 %v1283_v3 }
  0x7c   :  { %507 = vmatmul.mubr.f32.gmra.mrb[44].mxu0 %v268_v18 }
  0x7d   :  { %512 = vmatprep.mubr.f32.mxu0 %v1283_v3 }
  0x80   :  { %513 = vmatmul.mubr.f32.gmra.mrb[46].mxu0 %v269_v20 }
  0xf7   :  { %v376_v21 = vpop.f32.mrb[0].mxu0  ;;  %v520_v55 = vpop.f32.mrb[0].mxu1 }
  0xf8   :  { %v567_v22 = vmul.f32 4.0, %v376_v21  ;;  %v378_v23 = vpop.f32.mrb[1].mxu0  ;;  %v615_v59 = vmul.f32 4.0, %v520_v55  ;;  %v522_v60 = vpop.f32.mrb[1].mxu1 }
  0xf9   :  { %v568_v24 = vmul.f32 4.0, %v378_v23  ;;  %v616_v0 = vmul.f32 4.0, %v522_v60 }
  0xfa   :  { %v631_v25 = vmax.f32 %v567_v22, 0.0  ;;  %v679_v6 = vmax.f32 %v615_v59, 0.0 }
  0xfb   :  { %v632_v26 = vmax.f32 %v568_v24, 0.0  ;;  %v382_v27 = vpop.f32.mrb[2].mxu0  ;;  %v526_v12 = vpop.f32.mrb[2].mxu1 }
  0xfc   :  { %v695_v28 = vmin.f32 %v631_v25, 4.0  ;;  %v569_v29 = vmul.f32 4.0, %v382_v27  ;;  %v384_v30 = vpop.f32.mrb[3].mxu0  ;;  %v1529_v17 = vpop.f32.mrb[3].mxu1  ;;  %v743_v21 = vmin.f32 %v679_v6, 4.0 }
  0xfd   :  { %v696_v31 = vmin.f32 %v632_v26, 4.0  ;;  %v570_v32 = vmul.f32 4.0, %v384_v30  ;;  %v680_v26 = vmax.f32 %v616_v0, 0.0 }
  0xfe   :  { %v759_v33 = vadd.f32 0.5, %v695_v28  ;;  %v633_v34 = vmax.f32 %v569_v29, 0.0 }
  0xff   :  { %v760_v35 = vadd.f32 0.5, %v696_v31  ;;  %v634_v36 = vmax.f32 %v570_v32, 0.0  ;;  %v388_v37 = vpop.f32.mrb[4].mxu0  ;;  %v807_v31 = vadd.f32 0.5, %v743_v21  ;;  %v1533_v32 = vpop.f32.mrb[4].mxu1 }
 0x100   :  { %v697_v38 = vmin.f32 %v633_v34, 4.0  ;;  %v571_v3 = vmul.f32 4.0, %v388_v37  ;;  %v390_v39 = vpop.f32.mrb[5].mxu0  ;;  %v823_v40 = vfloor.f32 %v759_v33  ;;  %v1535_v37 = vpop.f32.mrb[5].mxu1 }
 0x101   :  { %v824_v41 = vfloor.f32 %v760_v35  ;;  %v698_v42 = vmin.f32 %v634_v36, 4.0  ;;  %v572_v43 = vmul.f32 4.0, %v390_v39  ;;  %v744_v36 = vmin.f32 %v680_v26, 4.0 }
 0x102   :  { %v761_v44 = vadd.f32 0.5, %v697_v38  ;;  %v635_v45 = vmax.f32 %v571_v3, 0.0  ;;  %v887_v49 = vmul.f32 0.25, %v823_v40  ;;  %v871_v40 = vfloor.f32 %v807_v31 }
 0x103   :  { %v762_v46 = vadd.f32 0.5, %v698_v42  ;;  %v636_v47 = vmax.f32 %v572_v43, 0.0  ;;  %v394_v48 = vpop.f32.mrb[6].mxu0  ;;  %v1523_v50 = vmul.f32 0.25, %v824_v41 }
 0x104   :  { %v699_v51 = vmin.f32 %v635_v45, 4.0  ;;  %v573_v52 = vmul.f32 4.0, %v394_v48  ;;  %v396_v53 = vpop.f32.mrb[7].mxu0  ;;  %v825_v54 = vfloor.f32 %v761_v44  ;;  %v808_v45 = vadd.f32 0.5, %v744_v36 }
 0x105   :  { %v826_v56 = vfloor.f32 %v762_v46  ;;  %v700_v57 = vmin.f32 %v636_v47, 4.0  ;;  %v574_v58 = vmul.f32 4.0, %v396_v53 }
 0x106   :  { %v763_v61 = vadd.f32 0.5, %v699_v51  ;;  %v637_v62 = vmax.f32 %v573_v52, 0.0  ;;  %v889_v63 = vmul.f32 0.25, %v825_v54  ;;  %v1539_v52 = vpop.f32.mrb[6].mxu1 }
 0x107   :  { %v1525_v1 = vmul.f32 0.25, %v826_v56  ;;  %v764_v2 = vadd.f32 0.5, %v700_v57  ;;  %v638_v4 = vmax.f32 %v574_v58, 0.0  ;;  %v400_v5 = vpop.f32.mrb[8].mxu0  ;;  %v1543_v57 = vpop.f32.mrb[7].mxu1 }
 0x108   :  { %v827_v7 = vfloor.f32 %v763_v61  ;;  %v701_v8 = vmin.f32 %v637_v62, 4.0  ;;  %v575_v9 = vmul.f32 4.0, %v400_v5  ;;  %v402_v10 = vpop.f32.mrb[9].mxu0  ;;  %v951_v11 = vpack.c.bf16 %v889_v63, %v887_v49 }
 0x109   :  { %v967_v13 = vpack.c.bf16 %v1525_v1, %v1523_v50  ;;  %v828_v14 = vfloor.f32 %v764_v2  ;;  %v702_v15 = vmin.f32 %v638_v4, 4.0  ;;  %v576_v16 = vmul.f32 4.0, %v402_v10  ;;  %v1549_v10 = vpop.f32.mrb[8].mxu1 }
 0x10a   :  { %v891_v18 = vmul.f32 0.25, %v827_v7  ;;  %v765_v19 = vadd.f32 0.5, %v701_v8  ;;  %v639_v20 = vmax.f32 %v575_v9, 0.0  ;;  %999 = vxpose.xlu1.c.b16.start [1/8] %v951_v11, 128  ;;  %v1545_v61 = vmul.f32 0.25, %v871_v40 }
 0x10b   :  { %v1531_v22 = vmul.f32 0.25, %v828_v14  ;;  %v766_v23 = vadd.f32 0.5, %v702_v15  ;;  %v640_v24 = vmax.f32 %v576_v16, 0.0  ;;  %v406_v25 = vpop.f32.mrb[10].mxu0  ;;  %v872_v4 = vfloor.f32 %v808_v45 }
 0x10c   :  { %v829_v27 = vfloor.f32 %v765_v19  ;;  %v703_v28 = vmin.f32 %v639_v20, 4.0  ;;  %v577_v29 = vmul.f32 4.0, %v406_v25  ;;  %v408_v30 = vpop.f32.mrb[11].mxu0  ;;  %v617_v9 = vmul.f32 4.0, %v526_v12 }
 0x10d   :  { %v830_v33 = vfloor.f32 %v766_v23  ;;  %v704_v34 = vmin.f32 %v640_v24, 4.0  ;;  %v578_v35 = vmul.f32 4.0, %v408_v30  ;;  %v1551_v16 = vmul.f32 0.25, %v872_v4 }
 0x10e   :  { %v893_v38 = vmul.f32 0.25, %v829_v27  ;;  %v767_v3 = vadd.f32 0.5, %v703_v28  ;;  %v641_v39 = vmax.f32 %v577_v29, 0.0  ;;  %v681_v23 = vmax.f32 %v617_v9, 0.0 }
 0x10f   :  { %v1537_v41 = vmul.f32 0.25, %v830_v33  ;;  %v768_v42 = vadd.f32 0.5, %v704_v34  ;;  %v642_v43 = vmax.f32 %v578_v35, 0.0  ;;  %v412_v44 = vpop.f32.mrb[12].mxu0  ;;  %v618_v12 = vmul.f32 4.0, %v1529_v17 }
 0x110   :  { %v831_v46 = vfloor.f32 %v767_v3  ;;  %v705_v47 = vmin.f32 %v641_v39, 4.0  ;;  %v579_v48 = vmul.f32 4.0, %v412_v44  ;;  %v414_v49 = vpop.f32.mrb[13].mxu0  ;;  %v952_v51 = vpack.c.bf16 %v893_v38, %v891_v18  ;;  %v1553_v18 = vpop.f32.mrb[9].mxu1 }
 0x111   :  { %v968_v53 = vpack.c.bf16 %v1537_v41, %v1531_v22  ;;  %v832_v54 = vfloor.f32 %v768_v42  ;;  %v706_v55 = vmin.f32 %v642_v43, 4.0  ;;  %v580_v56 = vmul.f32 4.0, %v414_v49  ;;  %v1558_v34 = vpop.f32.mrb[10].mxu1 }
 0x112   :  { %v895_v58 = vmul.f32 0.25, %v831_v46  ;;  %v769_v59 = vadd.f32 0.5, %v705_v47  ;;  %v643_v60 = vmax.f32 %v579_v48, 0.0  ;;  %1000 = vxpose.xlu1.c.b16.cont [2/8] %v952_v51, 128  ;;  %v1562_v39 = vpop.f32.mrb[11].mxu1  ;;  %v745_v17 = vmin.f32 %v681_v23, 4.0 }
 0x113   :  { %v1547_v62 = vmul.f32 0.25, %v832_v54  ;;  %v770_v63 = vadd.f32 0.5, %v706_v55  ;;  %v644_v0 = vmax.f32 %v580_v56, 0.0  ;;  %v418_v2 = vpop.f32.mrb[14].mxu0  ;;  %v682_v48 = vmax.f32 %v618_v12, 0.0 }
 0x114   :  { %v833_v5 = vfloor.f32 %v769_v59  ;;  %v707_v6 = vmin.f32 %v643_v60, 4.0  ;;  %v581_v7 = vmul.f32 4.0, %v418_v2  ;;  %v420_v8 = vpop.f32.mrb[15].mxu0  ;;  %v809_v56 = vadd.f32 0.5, %v745_v17 }
 0x115   :  { %v834_v11 = vfloor.f32 %v770_v63  ;;  %v708_v14 = vmin.f32 %v644_v0, 4.0  ;;  %v582_v15 = vmul.f32 4.0, %v420_v8  ;;  %v746_v0 = vmin.f32 %v682_v48, 4.0 }
 0x116   :  { %v897_v19 = vmul.f32 0.25, %v833_v5  ;;  %v771_v20 = vadd.f32 0.5, %v707_v6  ;;  %v645_v21 = vmax.f32 %v581_v7, 0.0  ;;  %v873_v7 = vfloor.f32 %v809_v56 }
 0x117   :  { %v1555_v24 = vmul.f32 0.25, %v834_v11  ;;  %v772_v25 = vadd.f32 0.5, %v708_v14  ;;  %v646_v26 = vmax.f32 %v582_v15, 0.0  ;;  %v424_v27 = vpop.f32.mrb[16].mxu0  ;;  %v810_v15 = vadd.f32 0.5, %v746_v0 }
 0x118   :  { %v835_v28 = vfloor.f32 %v771_v20  ;;  %v709_v29 = vmin.f32 %v645_v21, 4.0  ;;  %v583_v30 = vmul.f32 4.0, %v424_v27  ;;  %v426_v31 = vpop.f32.mrb[17].mxu0  ;;  %v953_v33 = vpack.c.bf16 %v897_v19, %v895_v58  ;;  %v1566_v58 = vpop.f32.mrb[12].mxu1 }
 0x119   :  { %v969_v35 = vpack.c.bf16 %v1555_v24, %v1547_v62  ;;  %v836_v36 = vfloor.f32 %v772_v25  ;;  %v710_v38 = vmin.f32 %v646_v26, 4.0  ;;  %v584_v3 = vmul.f32 4.0, %v426_v31  ;;  %v1568_v2 = vpop.f32.mrb[13].mxu1 }
 0x11a   :  { %v899_v40 = vmul.f32 0.25, %v835_v28  ;;  %v773_v42 = vadd.f32 0.5, %v709_v29  ;;  %v647_v43 = vmax.f32 %v583_v30, 0.0  ;;  %1001 = vxpose.xlu1.c.b16.cont [3/8] %v953_v33, 128  ;;  %v1572_v26 = vpop.f32.mrb[14].mxu1  ;;  %v874_v17 = vfloor.f32 %v810_v15 }
 0x11b   :  { %v1564_v44 = vmul.f32 0.25, %v836_v36  ;;  %v774_v45 = vadd.f32 0.5, %v710_v38  ;;  %v648_v46 = vmax.f32 %v584_v3, 0.0  ;;  %v430_v47 = vpop.f32.mrb[18].mxu0  ;;  %v1576_v30 = vpop.f32.mrb[15].mxu1  ;;  %v1578_v38 = vmul.f32 0.25, %v873_v7 }
 0x11c   :  { %v837_v49 = vfloor.f32 %v773_v42  ;;  %v711_v51 = vmin.f32 %v647_v43, 4.0  ;;  %v585_v54 = vmul.f32 4.0, %v430_v47  ;;  %v432_v55 = vpop.f32.mrb[19].mxu0  ;;  %v1583_v56 = vmul.f32 0.25, %v874_v17 }
 0x11d   :  { %v838_v59 = vfloor.f32 %v774_v45  ;;  %v712_v60 = vmin.f32 %v648_v46, 4.0  ;;  %v586_v63 = vmul.f32 4.0, %v432_v55 }
 0x11e   :  { %v901_v4 = vmul.f32 0.25, %v837_v49  ;;  %v775_v5 = vadd.f32 0.5, %v711_v51  ;;  %v649_v6 = vmax.f32 %v585_v54, 0.0  ;;  %v619_v49 = vmul.f32 4.0, %v1533_v32 }
 0x11f   :  { %v1570_v8 = vmul.f32 0.25, %v838_v59  ;;  %v776_v9 = vadd.f32 0.5, %v712_v60  ;;  %v650_v11 = vmax.f32 %v586_v63, 0.0  ;;  %v436_v14 = vpop.f32.mrb[20].mxu0  ;;  %v979_v62 = vpack.c.bf16 %v1583_v56, %v1551_v16 }
 0x120   :  { %v839_v19 = vfloor.f32 %v775_v5  ;;  %v713_v20 = vmin.f32 %v649_v6, 4.0  ;;  %v587_v21 = vmul.f32 4.0, %v436_v14  ;;  %v438_v23 = vpop.f32.mrb[21].mxu0  ;;  %v954_v25 = vpack.c.bf16 %v901_v4, %v899_v40 }
 0x121   :  { %v970_v27 = vpack.c.bf16 %v1570_v8, %v1564_v44  ;;  %v840_v12 = vfloor.f32 %v776_v9  ;;  %v714_v28 = vmin.f32 %v650_v11, 4.0  ;;  %v588_v29 = vmul.f32 4.0, %v438_v23 }
 0x122   :  { %v903_v31 = vmul.f32 0.25, %v839_v19  ;;  %v777_v33 = vadd.f32 0.5, %v713_v20  ;;  %v651_v36 = vmax.f32 %v587_v21, 0.0  ;;  %1002 = vxpose.xlu1.c.b16.cont [4/8] %v954_v25, 128  ;;  %v683_v0 = vmax.f32 %v619_v49, 0.0 }
 0x123   :  { %v1580_v3 = vmul.f32 0.25, %v840_v12  ;;  %v778_v42 = vadd.f32 0.5, %v714_v28  ;;  %v652_v40 = vmax.f32 %v588_v29, 0.0  ;;  %v442_v43 = vpop.f32.mrb[22].mxu0  ;;  %v620_v9 = vmul.f32 4.0, %v1535_v37 }
 0x124   :  { %v841_v45 = vfloor.f32 %v777_v33  ;;  %v715_v46 = vmin.f32 %v651_v36, 4.0  ;;  %v589_v47 = vmul.f32 4.0, %v442_v43  ;;  %v444_v48 = vpop.f32.mrb[23].mxu0  ;;  %v747_v33 = vmin.f32 %v683_v0, 4.0 }
 0x125   :  { %v842_v51 = vfloor.f32 %v778_v42  ;;  %v716_v54 = vmin.f32 %v652_v40, 4.0  ;;  %v590_v55 = vmul.f32 4.0, %v444_v48  ;;  %v684_v43 = vmax.f32 %v620_v9, 0.0 }
 0x126   :  { %v905_v59 = vmul.f32 0.25, %v841_v45  ;;  %v779_v60 = vadd.f32 0.5, %v715_v46  ;;  %v653_v63 = vmax.f32 %v589_v47, 0.0  ;;  %v811_v47 = vadd.f32 0.5, %v747_v33 }
 0x127   :  { %v1585_v4 = vmul.f32 0.25, %v842_v51  ;;  %v780_v5 = vadd.f32 0.5, %v716_v54  ;;  %v654_v6 = vmax.f32 %v590_v55, 0.0  ;;  %v448_v7 = vpop.f32.mrb[24].mxu0  ;;  %v748_v54 = vmin.f32 %v684_v43, 4.0 }
 0x128   :  { %v843_v11 = vfloor.f32 %v779_v60  ;;  %v717_v14 = vmin.f32 %v653_v63, 4.0  ;;  %v591_v15 = vmul.f32 4.0, %v448_v7  ;;  %v450_v32 = vpop.f32.mrb[25].mxu0  ;;  %v955_v19 = vpack.c.bf16 %v905_v59, %v903_v31 }
 0x129   :  { %v844_v21 = vfloor.f32 %v780_v5  ;;  %v718_v23 = vmin.f32 %v654_v6, 4.0  ;;  %v592_v25 = vmul.f32 4.0, %v450_v32  ;;  %v875_v63 = vfloor.f32 %v811_v47 }
 0x12a   :  { %v907_v12 = vmul.f32 0.25, %v843_v11  ;;  %v781_v28 = vadd.f32 0.5, %v717_v14  ;;  %v655_v29 = vmax.f32 %v591_v15, 0.0  ;;  %1003 = vxpose.xlu1.c.b16.cont [5/8] %v955_v19, 128  ;;  %v812_v11 = vadd.f32 0.5, %v748_v54 }
 0x12b   :  { %v1590_v36 = vmul.f32 0.25, %v844_v21  ;;  %v782_v42 = vadd.f32 0.5, %v718_v23  ;;  %v656_v37 = vmax.f32 %v592_v25, 0.0  ;;  %v454_v40 = vpop.f32.mrb[26].mxu0 }
 0x12c   :  { %v845_v17 = vfloor.f32 %v781_v28  ;;  %v719_v45 = vmin.f32 %v655_v29, 4.0  ;;  %v593_v31 = vmul.f32 4.0, %v454_v40  ;;  %v456_v46 = vpop.f32.mrb[27].mxu0 }
 0x12d   :  { %v846_v48 = vfloor.f32 %v782_v42  ;;  %v720_v49 = vmin.f32 %v656_v37, 4.0  ;;  %v594_v51 = vmul.f32 4.0, %v456_v46  ;;  %v1596_v37 = vmul.f32 0.25, %v875_v63 }
 0x12e   :  { %v909_v55 = vmul.f32 0.25, %v845_v17  ;;  %v783_v59 = vadd.f32 0.5, %v719_v45  ;;  %v657_v60 = vmax.f32 %v593_v31, 0.0  ;;  %v876_v31 = vfloor.f32 %v812_v11 }
 0x12f   :  { %v1592_v0 = vmul.f32 0.25, %v846_v48  ;;  %v784_v5 = vadd.f32 0.5, %v720_v49  ;;  %v658_v6 = vmax.f32 %v594_v51, 0.0  ;;  %v460_v7 = vpop.f32.mrb[28].mxu0  ;;  %v621_v49 = vmul.f32 4.0, %v1539_v52 }
 0x130   :  { %v847_v9 = vfloor.f32 %v783_v59  ;;  %v721_v14 = vmin.f32 %v657_v60, 4.0  ;;  %v595_v15 = vmul.f32 4.0, %v460_v7  ;;  %v462_v32 = vpop.f32.mrb[29].mxu0  ;;  %v956_v19 = vpack.c.bf16 %v909_v55, %v907_v12 }
 0x131   :  { %v848_v23 = vfloor.f32 %v784_v5  ;;  %v722_v25 = vmin.f32 %v658_v6, 4.0  ;;  %v596_v28 = vmul.f32 4.0, %v462_v32  ;;  %v1601_v59 = vmul.f32 0.25, %v876_v31 }
 0x132   :  { %v911_v29 = vmul.f32 0.25, %v847_v9  ;;  %v785_v33 = vadd.f32 0.5, %v721_v14  ;;  %v659_v42 = vmax.f32 %v595_v15, 0.0  ;;  %1004 = vxpose.xlu1.c.b16.cont [6/8] %v956_v19, 128  ;;  %v685_v6 = vmax.f32 %v621_v49, 0.0 }
 0x133   :  { %v1598_v40 = vmul.f32 0.25, %v848_v23  ;;  %v786_v43 = vadd.f32 0.5, %v722_v25  ;;  %v660_v17 = vmax.f32 %v596_v28, 0.0  ;;  %v466_v45 = vpop.f32.mrb[30].mxu0  ;;  %v622_v15 = vmul.f32 4.0, %v1543_v57 }
 0x134   :  { %v849_v46 = vfloor.f32 %v785_v33  ;;  %v723_v12 = vmin.f32 %v659_v42, 4.0  ;;  %v597_v47 = vmul.f32 4.0, %v466_v45  ;;  %v468_v48 = vpop.f32.mrb[31].mxu0  ;;  %v1716_v44 = vpack.c.bf16 %v1592_v0, %v1590_v36 }
 0x135   :  { %v850_v51 = vfloor.f32 %v786_v43  ;;  %v724_v54 = vmin.f32 %v660_v17, 4.0  ;;  %v598_v55 = vmul.f32 4.0, %v468_v48  ;;  %v686_v49 = vmax.f32 %v622_v15, 0.0 }
 0x136   :  { %v913_v60 = vmul.f32 0.25, %v849_v46  ;;  %v787_v63 = vadd.f32 0.5, %v723_v12  ;;  %v661_v5 = vmax.f32 %v597_v47, 0.0  ;;  %v749_v46 = vmin.f32 %v685_v6, 4.0 }
 0x137   :  { %v1603_v7 = vmul.f32 0.25, %v850_v51  ;;  %v788_v9 = vadd.f32 0.5, %v724_v54  ;;  %v662_v14 = vmax.f32 %v598_v55, 0.0  ;;  %v472_v11 = vpop.f32.mrb[32].mxu0 }
 0x138   :  { %v851_v32 = vfloor.f32 %v787_v63  ;;  %v725_v19 = vmin.f32 %v661_v5, 4.0  ;;  %v599_v23 = vmul.f32 4.0, %v472_v11  ;;  %v474_v52 = vpop.f32.mrb[33].mxu0  ;;  %v957_v25 = vpack.c.bf16 %v913_v60, %v911_v29 }
 0x139   :  { %v852_v33 = vfloor.f32 %v788_v9  ;;  %v726_v42 = vmin.f32 %v662_v14, 4.0  ;;  %v600_v43 = vmul.f32 4.0, %v474_v52  ;;  %v813_v60 = vadd.f32 0.5, %v749_v46 }
 0x13a   :  { %v915_v17 = vmul.f32 0.25, %v851_v32  ;;  %v789_v45 = vadd.f32 0.5, %v725_v19  ;;  %v663_v31 = vmax.f32 %v599_v23, 0.0  ;;  %1005 = vxpose.xlu1.c.b16.cont [7/8] %v957_v25, 128  ;;  %v750_v14 = vmin.f32 %v686_v49, 4.0 }
 0x13b   :  { %v1608_v12 = vmul.f32 0.25, %v852_v33  ;;  %v790_v47 = vadd.f32 0.5, %v726_v42  ;;  %v664_v57 = vmax.f32 %v600_v43, 0.0  ;;  %v478_v48 = vpop.f32.mrb[34].mxu0  ;;  %v877_v23 = vfloor.f32 %v813_v60 }
 0x13c   :  { %v853_v51 = vfloor.f32 %v789_v45  ;;  %v727_v54 = vmin.f32 %v663_v31, 4.0  ;;  %v601_v29 = vmul.f32 4.0, %v478_v48  ;;  %v480_v55 = vpop.f32.mrb[35].mxu0  ;;  %v814_v42 = vadd.f32 0.5, %v750_v14 }
 0x13d   :  { %v854_v63 = vfloor.f32 %v790_v47  ;;  %v728_v5 = vmin.f32 %v664_v57, 4.0  ;;  %v602_v9 = vmul.f32 4.0, %v480_v55  ;;  %v1614_v55 = vmul.f32 0.25, %v877_v23 }
 0x13e   :  { %v917_v11 = vmul.f32 0.25, %v853_v51  ;;  %v791_v32 = vadd.f32 0.5, %v727_v54  ;;  %v665_v19 = vmax.f32 %v601_v29, 0.0  ;;  %v878_v14 = vfloor.f32 %v814_v42 }
 0x13f   :  { %v1610_v6 = vmul.f32 0.25, %v854_v63  ;;  %v792_v52 = vadd.f32 0.5, %v728_v5  ;;  %v666_v25 = vmax.f32 %v602_v9, 0.0  ;;  %v484_v33 = vpop.f32.mrb[36].mxu0  ;;  %v624_v42 = vmul.f32 4.0, %v1553_v18 }
 0x140   :  { %v729_v15 = vmin.f32 %v665_v19, 4.0  ;;  %v603_v43 = vmul.f32 4.0, %v484_v33  ;;  %v486_v45 = vpop.f32.mrb[37].mxu0  ;;  %v958_v31 = vpack.c.bf16 %v917_v11, %v915_v17  ;;  %v855_v48 = vfloor.f32 %v791_v32 }
 0x141   :  { %v856_v47 = vfloor.f32 %v792_v52  ;;  %v730_v57 = vmin.f32 %v666_v25, 4.0  ;;  %v604_v49 = vmul.f32 4.0, %v486_v45  ;;  %v623_v33 = vmul.f32 4.0, %v1549_v10 }
 0x142   :  { %v793_v51 = vadd.f32 0.5, %v729_v15  ;;  %v667_v54 = vmax.f32 %v603_v43, 0.0  ;;  %1006 = vxpose.xlu1.c.b16.end [8/8] %v958_v31, 128  ;;  %v919_v29 = vmul.f32 0.25, %v855_v48  ;;  %v1617_v15 = vmul.f32 0.25, %v878_v14 }
 0x143   :  { %v920_v60 = vmul.f32 0.25, %v856_v47  ;;  %v794_v63 = vadd.f32 0.5, %v730_v57  ;;  %v668_v5 = vmax.f32 %v604_v49, 0.0  ;;  %v490_v9 = vpop.f32.mrb[38].mxu0  ;;  %v687_v48 = vmax.f32 %v623_v33, 0.0 }
 0x144   :  { %v731_v19 = vmin.f32 %v667_v54, 4.0  ;;  %v605_v17 = vmul.f32 4.0, %v490_v9  ;;  %v492_v11 = vpop.f32.mrb[39].mxu0  ;;  %v857_v32 = vfloor.f32 %v793_v51  ;;  %v688_v18 = vmax.f32 %v624_v42, 0.0 }
 0x145   :  { %v858_v52 = vfloor.f32 %v794_v63  ;;  %v732_v25 = vmin.f32 %v668_v5, 4.0  ;;  %v606_v45 = vmul.f32 4.0, %v492_v11  ;;  %v1717_v8 = vpack.c.bf16 %v1603_v7, %v1598_v40 }
 0x146   :  { %v795_v43 = vadd.f32 0.5, %v731_v19  ;;  %v669_v31 = vmax.f32 %v605_v17, 0.0  ;;  %v921_v23 = vmul.f32 0.25, %v857_v32  ;;  %v751_v32 = vmin.f32 %v687_v48, 4.0 }
 0x147   :  { %v922_v47 = vmul.f32 0.25, %v858_v52  ;;  %v796_v57 = vadd.f32 0.5, %v732_v25  ;;  %v670_v49 = vmax.f32 %v606_v45, 0.0  ;;  %v496_v46 = vpop.f32.mrb[40].mxu0 }
 0x148   :  { %v859_v54 = vfloor.f32 %v795_v43  ;;  %v733_v9 = vmin.f32 %v669_v31, 4.0  ;;  %v607_v51 = vmul.f32 4.0, %v496_v46  ;;  %v498_v28 = vpop.f32.mrb[41].mxu0  ;;  %v959_v10 = vpack.c.bf16 %v921_v23, %v919_v29 }
 0x149   :  { %v860_v63 = vfloor.f32 %v796_v57  ;;  %v734_v5 = vmin.f32 %v670_v49, 4.0  ;;  %v608_v11 = vmul.f32 4.0, %v498_v28  ;;  %v975_v14 = vpack.c.bf16 %v922_v47, %v920_v60 }
 0x14a   :  { %v923_v21 = vmul.f32 0.25, %v859_v54  ;;  %v797_v19 = vadd.f32 0.5, %v733_v9  ;;  %v671_v17 = vmax.f32 %v607_v51, 0.0  ;;  %1015 = vxpose.xlu0.c.b16.start [1/8] %v959_v10, 128  ;;  %v815_v28 = vadd.f32 0.5, %v751_v32 }
 0x14b   :  { %v924_v33 = vmul.f32 0.25, %v860_v63  ;;  %v798_v52 = vadd.f32 0.5, %v734_v5  ;;  %v672_v25 = vmax.f32 %v608_v11, 0.0  ;;  %v502_v45 = vpop.f32.mrb[42].mxu0  ;;  %1170 = vmatprep.subr.bf16.mxu1 %v975_v14  ;;  %v752_v47 = vmin.f32 %v688_v18, 4.0 }
 0x14c   :  { %v861_v43 = vfloor.f32 %v797_v19  ;;  %v735_v31 = vmin.f32 %v671_v17, 4.0  ;;  %v609_v46 = vmul.f32 4.0, %v502_v45  ;;  %v504_v20 = vpop.f32.mrb[43].mxu0  ;;  %1171 = vmatpush3.bf16.msra.mxu1 %v967_v13  ;;  %v879_v54 = vfloor.f32 %v815_v28 }
 0x14d   :  { %v862_v29 = vfloor.f32 %v798_v52  ;;  %v736_v60 = vmin.f32 %v672_v25, 4.0  ;;  %v610_v23 = vmul.f32 4.0, %v504_v20  ;;  %v816_v63 = vadd.f32 0.5, %v752_v47 }
 0x14e   :  { %v925_v48 = vmul.f32 0.25, %v861_v43  ;;  %v799_v57 = vadd.f32 0.5, %v735_v31  ;;  %v673_v49 = vmax.f32 %v609_v46, 0.0  ;;  %v1623_v45 = vmul.f32 0.25, %v879_v54 }
 0x14f   :  { %v926_v9 = vmul.f32 0.25, %v862_v29  ;;  %v800_v51 = vadd.f32 0.5, %v736_v60  ;;  %v674_v42 = vmax.f32 %v610_v23, 0.0  ;;  %v508_v10 = vpop.f32.mrb[44].mxu0  ;;  %v880_v28 = vfloor.f32 %v816_v63 }
 0x150   :  { %v863_v5 = vfloor.f32 %v799_v57  ;;  %v737_v11 = vmin.f32 %v673_v49, 4.0  ;;  %v611_v14 = vmul.f32 4.0, %v508_v10  ;;  %v510_v19 = vpop.f32.mrb[45].mxu0  ;;  %v960_v50 = vpack.c.bf16 %v925_v48, %v923_v21 }
 0x151   :  { %v864_v1 = vfloor.f32 %v800_v51  ;;  %v738_v13 = vmin.f32 %v674_v42, 4.0  ;;  %v612_v17 = vmul.f32 4.0, %v510_v19  ;;  %v976_v32 = vpack.c.bf16 %v926_v9, %v924_v33 }
 0x152   :  { %v927_v20 = vmul.f32 0.25, %v863_v5  ;;  %v801_v52 = vadd.f32 0.5, %v737_v11  ;;  %v675_v25 = vmax.f32 %v611_v14, 0.0  ;;  %1016 = vxpose.xlu0.c.b16.cont [2/8] %v960_v50, 128  ;;  %v625_v33 = vmul.f32 4.0, %v1558_v34 }
 0x153   :  { %v928_v18 = vmul.f32 0.25, %v864_v1  ;;  %v802_v43 = vadd.f32 0.5, %v738_v13  ;;  %v676_v31 = vmax.f32 %v612_v17, 0.0  ;;  %v514_v46 = vpop.f32.mrb[46].mxu0  ;;  %1172 = vmatprep.subr.bf16.mxu1 %v976_v32  ;;  %v1629_v49 = vmul.f32 0.25, %v880_v28 }
 0x154   :  { %v865_v29 = vfloor.f32 %v801_v52  ;;  %v739_v60 = vmin.f32 %v675_v25, 4.0  ;;  %v613_v23 = vmul.f32 4.0, %v514_v46  ;;  %v516_v21 = vpop.f32.mrb[47].mxu0  ;;  %1173 = vmatpush3.bf16.msra.mxu1 %v968_v53  ;;  %v689_v42 = vmax.f32 %v625_v33, 0.0 }
 0x155   :  { %v866_v47 = vfloor.f32 %v802_v43  ;;  %v740_v48 = vmin.f32 %v676_v31, 4.0  ;;  %v614_v57 = vmul.f32 4.0, %v516_v21  ;;  %v626_v11 = vmul.f32 4.0, %v1562_v39 }
 0x156   :  { %v929_v54 = vmul.f32 0.25, %v865_v29  ;;  %v803_v9 = vadd.f32 0.5, %v739_v60  ;;  %v677_v51 = vmax.f32 %v613_v23, 0.0  ;;  %v753_v22 = vmin.f32 %v689_v42, 4.0 }
 0x157   :  { %v930_v10 = vmul.f32 0.25, %v866_v47  ;;  %v804_v63 = vadd.f32 0.5, %v740_v48  ;;  %v678_v5 = vmax.f32 %v614_v57, 0.0  ;;  %v690_v50 = vmax.f32 %v626_v11, 0.0 }
 0x158   :  { %v867_v14 = vfloor.f32 %v803_v9  ;;  %v741_v19 = vmin.f32 %v677_v51, 4.0  ;;  %v961_v41 = vpack.c.bf16 %v929_v54, %v927_v20  ;;  %v817_v32 = vadd.f32 0.5, %v753_v22 }
 0x159   :  { %v868_v53 = vfloor.f32 %v804_v63  ;;  %v742_v34 = vmin.f32 %v678_v5, 4.0  ;;  %v977_v1 = vpack.c.bf16 %v930_v10, %v928_v18  ;;  %v627_v52 = vmul.f32 4.0, %v1566_v58 }
 0x15a   :  { %v931_v13 = vmul.f32 0.25, %v867_v14  ;;  %v805_v17 = vadd.f32 0.5, %v741_v19  ;;  %1017 = vxpose.xlu0.c.b16.cont [3/8] %v961_v41, 128  ;;  %v754_v31 = vmin.f32 %v690_v50, 4.0  ;;  %v628_v39 = vmul.f32 4.0, %v1568_v2 }
 0x15b   :  { %v932_v25 = vmul.f32 0.25, %v868_v53  ;;  %v806_v43 = vadd.f32 0.5, %v742_v34  ;;  %1174 = vmatprep.subr.bf16.mxu1 %v977_v1  ;;  %v881_v28 = vfloor.f32 %v817_v32  ;;  %v691_v29 = vmax.f32 %v627_v52, 0.0 }
 0x15c   :  { %v869_v46 = vfloor.f32 %v805_v17  ;;  %1175 = vmatpush3.bf16.msra.mxu1 %v969_v35  ;;  %v629_v20 = vmul.f32 4.0, %v1572_v26  ;;  %v818_v60 = vadd.f32 0.5, %v754_v31  ;;  %v692_v23 = vmax.f32 %v628_v39, 0.0 }
 0x15d   :  { %v870_v18 = vfloor.f32 %v806_v43  ;;  %v630_v58 = vmul.f32 4.0, %v1576_v30  ;;  %v945_v33 = vmul.f32 0.25, %v881_v28  ;;  %v755_v47 = vmin.f32 %v691_v29, 4.0 }
 0x15e   :  { %v933_v21 = vmul.f32 0.25, %v869_v46  ;;  %v693_v48 = vmax.f32 %v629_v20, 0.0  ;;  %v882_v2 = vfloor.f32 %v818_v60  ;;  %v756_v54 = vmin.f32 %v692_v23, 4.0 }
 0x15f   :  { %v934_v57 = vmul.f32 0.25, %v870_v18  ;;  %v694_v9 = vmax.f32 %v630_v58, 0.0  ;;  %v819_v51 = vadd.f32 0.5, %v755_v47  ;;  %v963_v11 = vpack.c.bf16 %v1578_v38, %v1545_v61 }
 0x160   :  { %v757_v42 = vmin.f32 %v693_v48, 4.0  ;;  %v962_v10 = vpack.c.bf16 %v933_v21, %v931_v13  ;;  %v946_v24 = vmul.f32 0.25, %v882_v2  ;;  %v820_v35 = vadd.f32 0.5, %v756_v54 }
 0x161   :  { %v758_v26 = vmin.f32 %v694_v9, 4.0  ;;  %v978_v63 = vpack.c.bf16 %v934_v57, %v932_v25  ;;  %v883_v5 = vfloor.f32 %v819_v51  ;;  %v980_v14 = vpack.c.bf16 %v1617_v15, %v1601_v59 }
 0x162   :  { %v821_v30 = vadd.f32 0.5, %v757_v42  ;;  %1018 = vxpose.xlu0.c.b16.cont [4/8] %v962_v10, 128  ;;  %v884_v19 = vfloor.f32 %v820_v35  ;;  %v964_v41 = vpack.c.bf16 %v1614_v55, %v1596_v37  ;;  %v981_v16 = vpack.c.bf16 %v946_v24, %v1629_v49 }
 0x163   :  { %v822_v22 = vadd.f32 0.5, %v758_v26  ;;  %1176 = vmatprep.subr.bf16.mxu1 %v978_v63  ;;  %v947_v56 = vmul.f32 0.25, %v883_v5  ;;  %v965_v34 = vpack.c.bf16 %v945_v33, %v1623_v45  ;;  %v1715_v50 = vpack.c.bf16 %v1585_v4, %v1580_v3 }
 0x164   :  { %v885_v53 = vfloor.f32 %v821_v30  ;;  %1177 = vmatpush3.bf16.msra.mxu1 %v970_v27  ;;  %v948_v61 = vmul.f32 0.25, %v884_v19  ;;  %v1718_v27 = vpack.c.bf16 %v1610_v6, %v1608_v12 }
 0x165   :  { %v886_v38 = vfloor.f32 %v822_v22  ;;  %1178 = vmatprep.subr.bf16.mxu1 %v979_v62 }
 0x166   :  { %v949_v59 = vmul.f32 0.25, %v885_v53  ;;  %1019 = vxpose.xlu0.c.b16.cont [5/8] %v963_v11, 128 }
 0x167   :  { %v950_v15 = vmul.f32 0.25, %v886_v38 }
 0x168   :  { %1179 = vmatpush3.bf16.msra.mxu1 %v1715_v50  ;;  %v966_v37 = vpack.c.bf16 %v949_v59, %v947_v56 }
 0x169   :  { %1180 = vmatprep.subr.bf16.mxu1 %v980_v14  ;;  %v982_v55 = vpack.c.bf16 %v950_v15, %v948_v61 }
 0x16a   :  { %1020 = vxpose.xlu0.c.b16.cont [6/8] %v964_v41, 128 }
 0x16c   :  { %1181 = vmatpush3.bf16.msra.mxu1 %v1716_v44 }
 0x16d   :  { %1182 = vmatprep.subr.bf16.mxu1 %v981_v16 }
 0x16e   :  { %1021 = vxpose.xlu0.c.b16.cont [7/8] %v965_v34, 128 }
 0x170   :  { %1183 = vmatpush3.bf16.msra.mxu1 %v1717_v8 }
 0x171   :  { %1184 = vmatprep.subr.bf16.mxu1 %v982_v55 }
 0x172   :  { %1022 = vxpose.xlu0.c.b16.end [8/8] %v966_v37, 128 }
 0x174   :  { %1185 = vmatpush3.bf16.msra.mxu1 %v1718_v27 }
 0x18c   :  { %v1007_v3 = vpop.trf.xlu1 }
 0x190   :  { %v1008_v36 = vpop.trf.xlu1 }
 0x194   :  { %v1009_v49 = vpop.trf.xlu1 }
 0x198   :  { %v1010_v40 = vpop.trf.xlu1 }
 0x19c   :  { %v1011_v12 = vpop.trf.xlu1 }
 0x1a0   :  { %v1012_v13 = vpop.trf.xlu1 }
 0x1a4   :  { %v1013_v32 = vpop.trf.xlu1 }
 0x1a8   :  { %v1014_v25 = vpop.trf.xlu1 }
 0x1bc   :  { %v1023_v4 = vpop.trf.xlu0 }
 0x1bd   :  { %1063 = vmatprep.mubr.bf16.mxu1 %v1023_v4 }
 0x1be   :  { %1064 = vmatmul.mubr.bf16.vlgmr.msra.gmra.mrb[16].mxu1 %v1007_v3 }
 0x1c0   :  { %v1024_v45 = vpop.trf.xlu0 }
 0x1c1   :  { %1071 = vmatprep.mubr.bf16.mxu1 %v1024_v45 }
 0x1c4   :  { %v1025_v0 = vpop.trf.xlu0 }
 0x1c6   :  { %1072 = vmatmul.mubr.bf16.gmra.mrb[20].mxu1 %v1008_v36 }
 0x1c7   :  { %1079 = vmatprep.mubr.bf16.mxu1 %v1025_v0 }
 0x1c8   :  { %v1026_v1 = vpop.trf.xlu0 }
 0x1cc   :  { %v1027_v7 = vpop.trf.xlu0 }
 0x1ce   :  { %1080 = vmatmul.mubr.bf16.gmra.mrb[24].mxu1 %v1009_v49 }
 0x1cf   :  { %1087 = vmatprep.mubr.bf16.mxu1 %v1026_v1 }
 0x1d0   :  { %v1028_v6 = vpop.trf.xlu0 }
 0x1d4   :  { %v1029_v17 = vpop.trf.xlu0 }
 0x1d6   :  { %1088 = vmatmul.mubr.bf16.gmra.mrb[28].mxu1 %v1010_v40 }
 0x1d7   :  { %1095 = vmatprep.mubr.bf16.mxu1 %v1027_v7 }
 0x1d8   :  { %v1030_v52 = vpop.trf.xlu0 }
 0x1de   :  { %1096 = vmatmul.mubr.bf16.gmra.mrb[32].mxu1 %v1011_v12 }
 0x1df   :  { %1103 = vmatprep.mubr.bf16.mxu1 %v1028_v6 }
 0x1e6   :  { %1104 = vmatmul.mubr.bf16.gmra.mrb[36].mxu1 %v1012_v13 }
 0x1e7   :  { %1111 = vmatprep.mubr.bf16.mxu1 %v1029_v17 }
 0x1ee   :  { %1112 = vmatmul.mubr.bf16.gmra.mrb[40].mxu1 %v1013_v32 }
 0x1ef   :  { %1119 = vmatprep.mubr.bf16.mxu1 %v1030_v52 }
 0x1f6   :  { %1120 = vmatmul.mubr.bf16.gmra.mrb[44].mxu1 %v1014_v25 }
 0x291   :  { %v1186_v43 = vpop.f32.mrb[16].mxu1 }
 0x292   :  { %v1187_v31 = vpop.f32.mrb[17].mxu1 }
 0x293   :  { %v1188_v39 = vadd.f32 %v1187_v31, %v1186_v43  ;;  %v1189_v46 = vpop.f32.mrb[18].mxu1 }
 0x294   :  { %v1190_v28 = vpop.f32.mrb[19].mxu1 }
 0x295   :  { %v1191_v29 = vadd.f32 %v1190_v28, %v1189_v46  ;;  %1144 = vst [vmem:[%s1714_s2] sm:$0xff] %v1188_v39 }
 0x297   :  { %1145 = vst [vmem:[%s1714_s2 + $0x8] sm:$0xff] %v1191_v29 }
 0x299   :  { %v1192_v20 = vpop.f32.mrb[20].mxu1 }
 0x29a   :  { %v1193_v18 = vpop.f32.mrb[21].mxu1 }
 0x29b   :  { %v1194_v60 = vadd.f32 %v1193_v18, %v1192_v20  ;;  %v1195_v23 = vpop.f32.mrb[22].mxu1 }
 0x29c   :  { %v1196_v58 = vpop.f32.mrb[23].mxu1 }
 0x29d   :  { %v1197_v21 = vadd.f32 %v1196_v58, %v1195_v23  ;;  %1146 = vst [vmem:[%s1714_s2 + $0x10] sm:$0xff] %v1194_v60 }
 0x29f   :  { %1147 = vst [vmem:[%s1714_s2 + $0x18] sm:$0xff] %v1197_v21 }
 0x2a1   :  { %v1198_v33 = vpop.f32.mrb[24].mxu1 }
 0x2a2   :  { %v1199_v47 = vpop.f32.mrb[25].mxu1 }
 0x2a3   :  { %v1200_v48 = vadd.f32 %v1199_v47, %v1198_v33  ;;  %v1201_v57 = vpop.f32.mrb[26].mxu1 }
 0x2a4   :  { %v1202_v2 = vpop.f32.mrb[27].mxu1 }
 0x2a5   :  { %v1203_v54 = vadd.f32 %v1202_v2, %v1201_v57  ;;  %1148 = vst [vmem:[%s1714_s2 + $0x20] sm:$0xff] %v1200_v48 }
 0x2a7   :  { %1149 = vst [vmem:[%s1714_s2 + $0x28] sm:$0xff] %v1203_v54 }
 0x2a9   :  { %v1204_v9 = vpop.f32.mrb[28].mxu1 }
 0x2aa   :  { %v1205_v51 = vpop.f32.mrb[29].mxu1 }
 0x2ab   :  { %v1206_v42 = vadd.f32 %v1205_v51, %v1204_v9  ;;  %v1207_v10 = vpop.f32.mrb[30].mxu1 }
 0x2ac   :  { %v1208_v62 = vpop.f32.mrb[31].mxu1 }
 0x2ad   :  { %v1209_v24 = vadd.f32 %v1208_v62, %v1207_v10  ;;  %1150 = vst [vmem:[%s1714_s2 + $0x30] sm:$0xff] %v1206_v42 }
 0x2af   :  { %1151 = vst [vmem:[%s1714_s2 + $0x38] sm:$0xff] %v1209_v24 }
 0x2b1   :  { %v1210_v35 = vpop.f32.mrb[32].mxu1 }
 0x2b2   :  { %v1211_v26 = vpop.f32.mrb[33].mxu1 }
 0x2b3   :  { %v1212_v63 = vadd.f32 %v1211_v26, %v1210_v35  ;;  %v1213_v5 = vpop.f32.mrb[34].mxu1 }
 0x2b4   :  { %v1214_v30 = vpop.f32.mrb[35].mxu1 }
 0x2b5   :  { %v1215_v11 = vadd.f32 %v1214_v30, %v1213_v5  ;;  %1152 = vst [vmem:[%s1714_s2 + $0x40] sm:$0xff] %v1212_v63 }
 0x2b7   :  { %1153 = vst [vmem:[%s1714_s2 + $0x48] sm:$0xff] %v1215_v11 }
 0x2b9   :  { %v1216_v14 = vpop.f32.mrb[36].mxu1 }
 0x2ba   :  { %v1217_v19 = vpop.f32.mrb[37].mxu1 }
 0x2bb   :  { %v1218_v22 = vadd.f32 %v1217_v19, %v1216_v14  ;;  %v1219_v41 = vpop.f32.mrb[38].mxu1 }
 0x2bc   :  { %v1220_v16 = vpop.f32.mrb[39].mxu1 }
 0x2bd   :  { %v1221_v56 = vadd.f32 %v1220_v16, %v1219_v41  ;;  %1154 = vst [vmem:[%s1714_s2 + $0x50] sm:$0xff] %v1218_v22 }
 0x2bf   :  { %1155 = vst [vmem:[%s1714_s2 + $0x58] sm:$0xff] %v1221_v56 }
 0x2c1   :  { %v1222_v53 = vpop.f32.mrb[40].mxu1 }
 0x2c2   :  { %v1223_v34 = vpop.f32.mrb[41].mxu1 }
 0x2c3   :  { %v1224_v61 = vadd.f32 %v1223_v34, %v1222_v53  ;;  %v1225_v38 = vpop.f32.mrb[42].mxu1 }
 0x2c4   :  { %v1226_v59 = vpop.f32.mrb[43].mxu1 }
 0x2c5   :  { %v1227_v15 = vadd.f32 %v1226_v59, %v1225_v38  ;;  %1156 = vst [vmem:[%s1714_s2 + $0x60] sm:$0xff] %v1224_v61 }
 0x2c7   :  { %1157 = vst [vmem:[%s1714_s2 + $0x68] sm:$0xff] %v1227_v15 }
 0x2c9   :  { %v1228_v50 = vpop.f32.mrb[44].mxu1 }
 0x2ca   :  { %v1229_v37 = vpop.f32.mrb[45].mxu1 }
 0x2cb   :  { %v1230_v55 = vadd.f32 %v1229_v37, %v1228_v50  ;;  %v1231_v44 = vpop.f32.mrb[46].mxu1 }
 0x2cc   :  { %v1232_v8 = vpop.f32.mrb[47].mxu1 }
 0x2cd   :  { %v1233_v27 = vadd.f32 %v1232_v8, %v1231_v44  ;;  %1158 = vst [vmem:[%s1714_s2 + $0x70] sm:$0xff] %v1230_v55 }
 0x2cf   :  { %1159 = vst [vmem:[%s1714_s2 + $0x78] sm:$0xff] %v1233_v27 }

// kernel: spike_attention_forward.3
= control target key start
LH: loop header
LB: loop body
LE: loop exit
PB: predicated region body
PF: predicated region fallthrough
CT: control target
= control target key end

     0   :  { %s1903_s0 = inlined_call_operand.vmem [shape: f32[256,128], index: 0, kind: input, shape index: {}]   ;;  %s1904_s1 = inlined_call_operand.vmem [shape: f32[128,128], index: 1, kind: input, shape index: {}]   ;;  %s1905_s2 = inlined_call_operand.vmem [shape: bf16[128,128], index: 2, kind: input, shape index: {}]   ;;  %s1906_s3 = inlined_call_operand.vmem [shape: bf16[128,128], index: 3, kind: input, shape index: {}]   ;;  %s1907_s4 = inlined_call_operand.hbm [shape: f32[256,128], index: 4, kind: output, shape index: {}]  }
   0x1   :  { %v243_v0 = vld [vmem:[%s1904_s1] sm:$0xff]  ;;  %v244_v1 = vld [vmem:[%s1904_s1 + $0x8] sm:$0xff]  ;;  %v245_v2 = vld [vmem:[%s1904_s1 + $0x10] sm:$0xff] }
   0x2   :  { %v1478_v3 = vpack.c.bf16 %v244_v1, %v243_v0  ;;  %v246_v4 = vld [vmem:[%s1904_s1 + $0x18] sm:$0xff]  ;;  %v247_v6 = vld [vmem:[%s1904_s1 + $0x20] sm:$0xff]  ;;  %v248_v7 = vld [vmem:[%s1904_s1 + $0x28] sm:$0xff] }
   0x3   :  { %v1482_v5 = vpack.c.bf16 %v246_v4, %v245_v2  ;;  %v1486_v8 = vpack.c.bf16 %v248_v7, %v247_v6  ;;  %v19_v9 = vld [vmem:[%s1903_s0] sm:$0xff]  ;;  %v249_v10 = vld [vmem:[%s1904_s1 + $0x30] sm:$0xff]  ;;  %v250_v11 = vld [vmem:[%s1904_s1 + $0x38] sm:$0xff] }
   0x4   :  { %1479 = vmatprep.subr.bf16.mxu0 %v1478_v3  ;;  %v51_v12 = vmul.f32 4.0, %v19_v9  ;;  %v20_v14 = vld [vmem:[%s1903_s0 + $0x8] sm:$0xff]  ;;  %v1490_v15 = vpack.c.bf16 %v250_v11, %v249_v10  ;;  %v21_v16 = vld [vmem:[%s1903_s0 + $0x10] sm:$0xff]  ;;  %v251_v17 = vld [vmem:[%s1904_s1 + $0x40] sm:$0xff] }
   0x5   :  { %1481 = vmatpush3.bf16.msra.mxu0 %v1478_v3  ;;  %v252_v18 = vld [vmem:[%s1904_s1 + $0x48] sm:$0xff]  ;;  %v52_v20 = vmul.f32 4.0, %v20_v14  ;;  %v22_v21 = vld [vmem:[%s1903_s0 + $0x18] sm:$0xff]  ;;  %v53_v23 = vmul.f32 4.0, %v21_v16  ;;  %v23_v24 = vld [vmem:[%s1903_s0 + $0x20] sm:$0xff] }
   0x6   :  { %1483 = vmatprep.subr.bf16.mxu0 %v1482_v5  ;;  %v83_v13 = vmax.f32 %v51_v12, 0.0  ;;  %v1494_v25 = vpack.c.bf16 %v252_v18, %v251_v17  ;;  %v253_v26 = vld [vmem:[%s1904_s1 + $0x50] sm:$0xff]  ;;  %v254_v27 = vld [vmem:[%s1904_s1 + $0x58] sm:$0xff]  ;;  %v54_v29 = vmul.f32 4.0, %v22_v21  ;;  %v24_v30 = vld [vmem:[%s1903_s0 + $0x28] sm:$0xff]  ;;  %v55_v33 = vmul.f32 4.0, %v23_v24 }
   0x7   :  { %v25_v31 = vld [vmem:[%s1903_s0 + $0x30] sm:$0xff]  ;;  %v84_v32 = vmax.f32 %v52_v20, 0.0  ;;  %v85_v35 = vmax.f32 %v53_v23, 0.0  ;;  %v1498_v36 = vpack.c.bf16 %v254_v27, %v253_v26  ;;  %v255_v37 = vld [vmem:[%s1904_s1 + $0x60] sm:$0xff]  ;;  %v56_v38 = vmul.f32 4.0, %v24_v30  ;;  %v256_v40 = vld [vmem:[%s1904_s1 + $0x68] sm:$0xff] }
   0x8   :  { %v115_v19 = vmin.f32 %v83_v13, 4.0  ;;  %v57_v39 = vmul.f32 4.0, %v25_v31  ;;  %v86_v41 = vmax.f32 %v54_v29, 0.0  ;;  %v26_v42 = vld [vmem:[%s1903_s0 + $0x38] sm:$0xff]  ;;  %v87_v44 = vmax.f32 %v55_v33, 0.0  ;;  %v257_v45 = vld [vmem:[%s1904_s1 + $0x70] sm:$0xff] }
   0x9   :  { %1485 = vmatpush3.bf16.msra.mxu0 %v1482_v5  ;;  %v116_v43 = vmin.f32 %v84_v32, 4.0  ;;  %v117_v46 = vmin.f32 %v85_v35, 4.0  ;;  %v1701_v47 = vld [vmem:[%s1906_s3] sm:$0xff]   ;;  %v1502_v48 = vpack.c.bf16 %v256_v40, %v255_v37  ;;  %v88_v49 = vmax.f32 %v56_v38, 0.0  ;;  %v258_v53 = vld [vmem:[%s1904_s1 + $0x78] sm:$0xff]  ;;  %v1712_v55 = vld [vmem:[%s1906_s3 + $0x8] sm:$0xff]  }
   0xa   :  { %1487 = vmatprep.subr.bf16.mxu0 %v1486_v8  ;;  %v147_v22 = vadd.f32 0.5, %v115_v19  ;;  %v89_v50 = vmax.f32 %v57_v39, 0.0  ;;  %v58_v51 = vmul.f32 4.0, %v26_v42  ;;  %v27_v52 = vld [vmem:[%s1903_s0 + $0x40] sm:$0xff]  ;;  %v118_v54 = vmin.f32 %v86_v41, 4.0  ;;  %1510 = vmatprep.subr.bf16.mxu1 %v1701_v47  ;;  %v28_v60 = vld [vmem:[%s1903_s0 + $0x48] sm:$0xff] }
   0xb   :  { %v148_v56 = vadd.f32 0.5, %v116_v43  ;;  %v119_v57 = vmin.f32 %v87_v44, 4.0  ;;  %1518 = vmatpush3.bf16.msra.mxu1 %v1701_v47  ;;  %v149_v58 = vadd.f32 0.5, %v117_v46  ;;  %v59_v59 = vmul.f32 4.0, %v27_v52  ;;  %v29_v1 = vld [vmem:[%s1903_s0 + $0x50] sm:$0xff]  ;;  %v30_v2 = vld [vmem:[%s1903_s0 + $0x58] sm:$0xff] }
   0xc   :  { %v179_v28 = vfloor.f32 %v147_v22  ;;  %1511 = vmatprep.subr.bf16.mxu1 %v1712_v55  ;;  %v1506_v61 = vpack.c.bf16 %v258_v53, %v257_v45  ;;  %v120_v62 = vmin.f32 %v88_v49, 4.0  ;;  %v121_v63 = vmin.f32 %v89_v50, 4.0  ;;  %v31_v4 = vld [vmem:[%s1903_s0 + $0x60] sm:$0xff]  ;;  %v1732_v5 = vld [vmem:[%s1906_s3 + $0x10] sm:$0xff]   ;;  %v32_v16 = vld [vmem:[%s1903_s0 + $0x68] sm:$0xff] }
   0xd   :  { %1489 = vmatpush3.bf16.msra.mxu0 %v1486_v8  ;;  %v90_v0 = vmax.f32 %v58_v51, 0.0  ;;  %v150_v3 = vadd.f32 0.5, %v118_v54  ;;  %v180_v6 = vfloor.f32 %v148_v56  ;;  %v151_v7 = vadd.f32 0.5, %v119_v57  ;;  %v33_v21 = vld [vmem:[%s1903_s0 + $0x70] sm:$0xff]  ;;  %v34_v32 = vld [vmem:[%s1903_s0 + $0x78] sm:$0xff]  ;;  %v35_v39 = vld [vmem:[%s1903_s0 + $0x80] sm:$0xff] }
   0xe   :  { %1491 = vmatprep.subr.bf16.mxu0 %v1490_v15  ;;  %v211_v34 = vmul.f32 0.25, %v179_v28  ;;  %v60_v8 = vmul.f32 4.0, %v28_v60  ;;  %v181_v9 = vfloor.f32 %v149_v58  ;;  %v91_v10 = vmax.f32 %v59_v59, 0.0  ;;  %v37_v53 = vld [vmem:[%s1903_s0 + $0x90] sm:$0xff] }
   0xf   :  { %1519 = vmatpush3.bf16.msra.mxu1 %v1712_v55  ;;  %v61_v11 = vmul.f32 4.0, %v29_v1  ;;  %v152_v12 = vadd.f32 0.5, %v120_v62  ;;  %v153_v13 = vadd.f32 0.5, %v121_v63  ;;  %v122_v14 = vmin.f32 %v90_v0, 4.0  ;;  %v38_v63 = vld [vmem:[%s1903_s0 + $0x98] sm:$0xff] }
  0x10   :  { %1334 = vmatprep.mubr.f32.mxu0 %v211_v34  ;;  %1512 = vmatprep.subr.bf16.mxu1 %v1732_v5  ;;  %v212_v17 = vmul.f32 0.25, %v180_v6  ;;  %v182_v18 = vfloor.f32 %v150_v3  ;;  %v92_v19 = vmax.f32 %v60_v8, 0.0  ;;  %v63_v20 = vmul.f32 4.0, %v31_v4  ;;  %v39_v3 = vld [vmem:[%s1903_s0 + $0xa0] sm:$0xff] }
  0x11   :  { %1493 = vmatpush3.bf16.msra.mxu0 %v1490_v15  ;;  %v62_v15 = vmul.f32 4.0, %v30_v2  ;;  %v213_v22 = vmul.f32 0.25, %v181_v9  ;;  %v183_v23 = vfloor.f32 %v151_v7  ;;  %v123_v24 = vmin.f32 %v91_v10, 4.0 }
  0x12   :  { %1495 = vmatprep.subr.bf16.mxu0 %v1494_v25  ;;  %v184_v26 = vfloor.f32 %v152_v12  ;;  %v185_v27 = vfloor.f32 %v153_v13  ;;  %v64_v28 = vmul.f32 4.0, %v32_v16  ;;  %v154_v29 = vadd.f32 0.5, %v122_v14 }
  0x13   :  { %1520 = vmatpush3.bf16.msra.mxu1 %v1732_v5  ;;  %v94_v30 = vmax.f32 %v62_v15, 0.0  ;;  %v65_v31 = vmul.f32 4.0, %v33_v21  ;;  %v214_v33 = vmul.f32 0.25, %v182_v18  ;;  %v124_v34 = vmin.f32 %v92_v19, 4.0 }
  0x14   :  { %v95_v35 = vmax.f32 %v63_v20, 0.0  ;;  %v155_v37 = vadd.f32 0.5, %v123_v24  ;;  %v216_v40 = vmul.f32 0.25, %v184_v26  ;;  %v217_v41 = vmul.f32 0.25, %v185_v27 }
  0x15   :  { %1497 = vmatpush3.bf16.msra.mxu0 %v1494_v25  ;;  %v93_v25 = vmax.f32 %v61_v11, 0.0  ;;  %v96_v42 = vmax.f32 %v64_v28, 0.0  ;;  %v66_v43 = vmul.f32 4.0, %v34_v32  ;;  %v186_v44 = vfloor.f32 %v154_v29 }
  0x16   :  { %1499 = vmatprep.subr.bf16.mxu0 %v1498_v36  ;;  %v126_v45 = vmin.f32 %v94_v30, 4.0  ;;  %v97_v46 = vmax.f32 %v65_v31, 0.0  ;;  %v156_v49 = vadd.f32 0.5, %v124_v34  ;;  %v127_v50 = vmin.f32 %v95_v35, 4.0 }
  0x17   :  { %v125_v38 = vmin.f32 %v93_v25, 4.0  ;;  %v187_v51 = vfloor.f32 %v155_v37  ;;  %v218_v54 = vmul.f32 0.25, %v186_v44  ;;  %v128_v56 = vmin.f32 %v96_v42, 4.0 }
  0x18   :  { %v129_v57 = vmin.f32 %v97_v46, 4.0  ;;  %v98_v58 = vmax.f32 %v66_v43, 0.0  ;;  %v188_v59 = vfloor.f32 %v156_v49  ;;  %v158_v60 = vadd.f32 0.5, %v126_v45 }
  0x19   :  { %1501 = vmatpush3.bf16.msra.mxu0 %v1498_v36  ;;  %v215_v36 = vmul.f32 0.25, %v183_v23  ;;  %v157_v52 = vadd.f32 0.5, %v125_v38  ;;  %v69_v2 = vmul.f32 4.0, %v37_v53  ;;  %v160_v4 = vadd.f32 0.5, %v128_v56 }
  0x1a   :  { %1503 = vmatprep.subr.bf16.mxu0 %v1502_v48  ;;  %v161_v6 = vadd.f32 0.5, %v129_v57  ;;  %v130_v7 = vmin.f32 %v98_v58, 4.0  ;;  %v70_v8 = vmul.f32 4.0, %v38_v63 }
  0x1b   :  { %v189_v0 = vfloor.f32 %v157_v52 }
  0x1d   :  { %1505 = vmatpush3.bf16.msra.mxu0 %v1502_v48  ;;  %v36_v48 = vld [vmem:[%s1903_s0 + $0x88] sm:$0xff] }
  0x1e   :  { %1507 = vmatprep.subr.bf16.mxu0 %v1506_v61  ;;  %v68_v62 = vmul.f32 4.0, %v36_v48 }
  0x21   :  { %1509 = vmatpush3.bf16.msra.mxu0 %v1506_v61  ;;  %v159_v61 = vadd.f32 0.5, %v127_v50 }
  0x22   :  { %1382 = vmatprep.subr.bf16.mxu0 %v1701_v47 }
  0x24   :  { %1335 = vmatmul.mubr.f32.vlgmr.msra.gmra.mrb[0].mxu0 %v212_v17 }
  0x25   :  { %1337 = vmatprep.mubr.f32.mxu0 %v213_v22  ;;  %1383 = vmatpush3.bf16.msra.mxu0 %v1701_v47  ;;  %v67_v47 = vmul.f32 4.0, %v35_v39 }
  0x26   :  { %1384 = vmatprep.subr.bf16.mxu0 %v1712_v55 }
  0x27   :  { %v99_v1 = vmax.f32 %v67_v47, 0.0 }
  0x28   :  { %1338 = vmatmul.mubr.f32.gmra.mrb[2].mxu0 %v214_v33 }
  0x29   :  { %1340 = vmatprep.mubr.f32.mxu0 %v215_v36  ;;  %1385 = vmatpush3.bf16.msra.mxu0 %v1712_v55  ;;  %v219_v55 = vmul.f32 0.25, %v187_v51 }
  0x2a   :  { %1386 = vmatprep.subr.bf16.mxu0 %v1732_v5 }
  0x2c   :  { %1341 = vmatmul.mubr.f32.gmra.mrb[4].mxu0 %v216_v40 }
  0x2d   :  { %1343 = vmatprep.mubr.f32.mxu0 %v217_v41  ;;  %1387 = vmatpush3.bf16.msra.mxu0 %v1732_v5 }
  0x2e   :  { %9 = vsyncpa [#allocation3], 0  ;;  %v220_v9 = vmul.f32 0.25, %v188_v59  ;;  %v190_v10 = vfloor.f32 %v158_v60  ;;  %v100_v11 = vmax.f32 %v68_v62, 0.0  ;;  %v71_v12 = vmul.f32 4.0, %v39_v3  ;;  %v40_v13 = vld [vmem:[%s1903_s0 + $0xa8] sm:$0xff] }
  0x2f   :  { %v41_v14 = vld [vmem:[%s1903_s0 + $0xb0] sm:$0xff]  ;;  %v221_v5 = vmul.f32 0.25, %v189_v0  ;;  %v191_v15 = vfloor.f32 %v159_v61  ;;  %v131_v16 = vmin.f32 %v99_v1, 4.0  ;;  %v101_v17 = vmax.f32 %v69_v2, 0.0  ;;  %v42_v26 = vld [vmem:[%s1903_s0 + $0xb8] sm:$0xff]  ;;  %v43_v31 = vld [vmem:[%s1903_s0 + $0xc0] sm:$0xff] }
  0x30   :  { %1344 = vmatmul.mubr.f32.gmra.mrb[6].mxu0 %v218_v54  ;;  %v162_v18 = vadd.f32 0.5, %v130_v7  ;;  %v102_v19 = vmax.f32 %v70_v8, 0.0  ;;  %v72_v20 = vmul.f32 4.0, %v40_v13  ;;  %v73_v21 = vmul.f32 4.0, %v41_v14  ;;  %v44_v44 = vld [vmem:[%s1903_s0 + $0xc8] sm:$0xff]  ;;  %v45_v45 = vld [vmem:[%s1903_s0 + $0xd0] sm:$0xff] }
  0x31   :  { %1346 = vmatprep.mubr.f32.mxu0 %v219_v55  ;;  %v222_v22 = vmul.f32 0.25, %v190_v10  ;;  %v192_v23 = vfloor.f32 %v160_v4  ;;  %v132_v24 = vmin.f32 %v100_v11, 4.0  ;;  %v103_v25 = vmax.f32 %v71_v12, 0.0  ;;  %v46_v59 = vld [vmem:[%s1903_s0 + $0xd8] sm:$0xff]  ;;  %v47_v60 = vld [vmem:[%s1903_s0 + $0xe0] sm:$0xff]  ;;  %v49_v10 = vld [vmem:[%s1903_s0 + $0xf0] sm:$0xff] }
  0x32   :  { %v223_v27 = vmul.f32 0.25, %v191_v15  ;;  %v193_v28 = vfloor.f32 %v161_v6  ;;  %v163_v29 = vadd.f32 0.5, %v131_v16  ;;  %v133_v30 = vmin.f32 %v101_v17, 4.0 }
  0x33   :  { %v134_v32 = vmin.f32 %v102_v19, 4.0  ;;  %v104_v33 = vmax.f32 %v72_v20, 0.0  ;;  %v105_v34 = vmax.f32 %v73_v21, 0.0  ;;  %v74_v35 = vmul.f32 4.0, %v42_v26 }
  0x34   :  { %1347 = vmatmul.mubr.f32.gmra.mrb[8].mxu0 %v220_v9  ;;  %v224_v36 = vmul.f32 0.25, %v192_v23  ;;  %v194_v37 = vfloor.f32 %v162_v18  ;;  %v164_v38 = vadd.f32 0.5, %v132_v24  ;;  %v135_v39 = vmin.f32 %v103_v25, 4.0  ;;  %v48_v9 = vld [vmem:[%s1903_s0 + $0xe8] sm:$0xff] }
  0x35   :  { %1349 = vmatprep.mubr.f32.mxu0 %v221_v5  ;;  %v225_v40 = vmul.f32 0.25, %v193_v28  ;;  %v195_v41 = vfloor.f32 %v163_v29  ;;  %v165_v42 = vadd.f32 0.5, %v133_v30  ;;  %v75_v43 = vmul.f32 4.0, %v43_v31 }
  0x36   :  { %v166_v46 = vadd.f32 0.5, %v134_v32  ;;  %v136_v48 = vmin.f32 %v104_v33, 4.0  ;;  %v137_v49 = vmin.f32 %v105_v34, 4.0  ;;  %v106_v50 = vmax.f32 %v74_v35, 0.0 }
  0x37   :  { %v226_v51 = vmul.f32 0.25, %v194_v37  ;;  %v196_v52 = vfloor.f32 %v164_v38  ;;  %v167_v47 = vadd.f32 0.5, %v135_v39  ;;  %v76_v53 = vmul.f32 4.0, %v44_v44 }
  0x38   :  { %1350 = vmatmul.mubr.f32.gmra.mrb[10].mxu0 %v222_v22  ;;  %v227_v54 = vmul.f32 0.25, %v195_v41  ;;  %v197_v56 = vfloor.f32 %v165_v42  ;;  %v107_v57 = vmax.f32 %v75_v43, 0.0  ;;  %v77_v58 = vmul.f32 4.0, %v45_v45  ;;  %v50_v22 = vld [vmem:[%s1903_s0 + $0xf8] sm:$0xff] }
  0x39   :  { %1352 = vmatprep.mubr.f32.mxu0 %v223_v27  ;;  %v198_v61 = vfloor.f32 %v166_v46  ;;  %v168_v62 = vadd.f32 0.5, %v136_v48  ;;  %v169_v63 = vadd.f32 0.5, %v137_v49  ;;  %v138_v55 = vmin.f32 %v106_v50, 4.0 }
  0x3a   :  { %v228_v0 = vmul.f32 0.25, %v196_v52  ;;  %v199_v1 = vfloor.f32 %v167_v47  ;;  %v108_v2 = vmax.f32 %v76_v53, 0.0  ;;  %v78_v3 = vmul.f32 4.0, %v46_v59 }
  0x3b   :  { %v229_v4 = vmul.f32 0.25, %v197_v56  ;;  %v139_v6 = vmin.f32 %v107_v57, 4.0  ;;  %v109_v7 = vmax.f32 %v77_v58, 0.0  ;;  %v79_v8 = vmul.f32 4.0, %v47_v60  ;;  %v1564_v60 = vld [vmem:[%s1906_s3 + $0x18] sm:$0xff]  }
  0x3c   :  { %1353 = vmatmul.mubr.f32.gmra.mrb[12].mxu0 %v224_v36  ;;  %v230_v11 = vmul.f32 0.25, %v198_v61  ;;  %v200_v12 = vfloor.f32 %v168_v62  ;;  %v201_v13 = vfloor.f32 %v169_v63  ;;  %v170_v14 = vadd.f32 0.5, %v138_v55  ;;  %1388 = vmatprep.subr.bf16.mxu0 %v1564_v60  ;;  %v1565_v61 = vld [vmem:[%s1906_s3 + $0x20] sm:$0xff]   ;;  %v1566_v62 = vld [vmem:[%s1906_s3 + $0x28] sm:$0xff]   ;;  %v1567_v63 = vld [vmem:[%s1906_s3 + $0x30] sm:$0xff]  }
  0x3d   :  { %1355 = vmatprep.mubr.f32.mxu0 %v225_v40  ;;  %v231_v5 = vmul.f32 0.25, %v199_v1  ;;  %v140_v15 = vmin.f32 %v108_v2, 4.0  ;;  %v110_v16 = vmax.f32 %v78_v3, 0.0  ;;  %v80_v17 = vmul.f32 4.0, %v48_v9  ;;  %1513 = vmatprep.subr.bf16.mxu1 %v1564_v60  ;;  %v1568_v55 = vld [vmem:[%s1906_s3 + $0x38] sm:$0xff]  }
  0x3e   :  { %v171_v18 = vadd.f32 0.5, %v139_v6  ;;  %v141_v19 = vmin.f32 %v109_v7, 4.0  ;;  %v111_v20 = vmax.f32 %v79_v8, 0.0  ;;  %v81_v21 = vmul.f32 4.0, %v49_v10  ;;  %1389 = vmatpush3.bf16.msra.mxu0 %v1564_v60  ;;  %1521 = vmatpush3.bf16.msra.mxu1 %v1564_v60 }
  0x3f   :  { %v232_v23 = vmul.f32 0.25, %v200_v12  ;;  %v233_v24 = vmul.f32 0.25, %v201_v13  ;;  %v202_v25 = vfloor.f32 %v170_v14  ;;  %v172_v26 = vadd.f32 0.5, %v140_v15  ;;  %1390 = vmatprep.subr.bf16.mxu0 %v1565_v61  ;;  %1514 = vmatprep.subr.bf16.mxu1 %v1565_v61 }
  0x40   :  { %1356 = vmatmul.mubr.f32.gmra.mrb[14].mxu0 %v226_v51  ;;  %v142_v27 = vmin.f32 %v110_v16, 4.0  ;;  %v112_v28 = vmax.f32 %v80_v17, 0.0  ;;  %v82_v29 = vmul.f32 4.0, %v50_v22  ;;  %v203_v30 = vfloor.f32 %v171_v18 }
  0x41   :  { %1358 = vmatprep.mubr.f32.mxu0 %v227_v54  ;;  %v173_v31 = vadd.f32 0.5, %v141_v19  ;;  %v143_v32 = vmin.f32 %v111_v20, 4.0  ;;  %v113_v33 = vmax.f32 %v81_v21, 0.0  ;;  %v234_v34 = vmul.f32 0.25, %v202_v25 }
  0x42   :  { %v204_v35 = vfloor.f32 %v172_v26  ;;  %v174_v36 = vadd.f32 0.5, %v142_v27  ;;  %v144_v37 = vmin.f32 %v112_v28, 4.0  ;;  %v114_v38 = vmax.f32 %v82_v29, 0.0  ;;  %1391 = vmatpush3.bf16.msra.mxu0 %v1565_v61  ;;  %1522 = vmatpush3.bf16.msra.mxu1 %v1565_v61 }
  0x43   :  { %v235_v39 = vmul.f32 0.25, %v203_v30  ;;  %v205_v40 = vfloor.f32 %v173_v31  ;;  %v175_v41 = vadd.f32 0.5, %v143_v32  ;;  %v145_v42 = vmin.f32 %v113_v33, 4.0  ;;  %1392 = vmatprep.subr.bf16.mxu0 %v1566_v62  ;;  %1515 = vmatprep.subr.bf16.mxu1 %v1566_v62 }
  0x44   :  { %1359 = vmatmul.mubr.f32.gmra.mrb[16].mxu0 %v228_v0  ;;  %v236_v43 = vmul.f32 0.25, %v204_v35  ;;  %v206_v44 = vfloor.f32 %v174_v36  ;;  %v176_v45 = vadd.f32 0.5, %v144_v37  ;;  %v146_v46 = vmin.f32 %v114_v38, 4.0  ;;  %v1818_v0 = vld [vmem:[%s1905_s2] sm:$0xff]  }
  0x45   :  { %1361 = vmatprep.mubr.f32.mxu0 %v229_v4  ;;  %v237_v48 = vmul.f32 0.25, %v205_v40  ;;  %v207_v49 = vfloor.f32 %v175_v41  ;;  %v177_v50 = vadd.f32 0.5, %v145_v42 }
  0x46   :  { %v238_v51 = vmul.f32 0.25, %v206_v44  ;;  %v208_v52 = vfloor.f32 %v176_v45  ;;  %v178_v47 = vadd.f32 0.5, %v146_v46  ;;  %1393 = vmatpush3.bf16.msra.mxu0 %v1566_v62  ;;  %1523 = vmatpush3.bf16.msra.mxu1 %v1566_v62 }
  0x47   :  { %v239_v53 = vmul.f32 0.25, %v207_v49  ;;  %v209_v54 = vfloor.f32 %v177_v50  ;;  %1394 = vmatprep.subr.bf16.mxu0 %v1567_v63  ;;  %1516 = vmatprep.subr.bf16.mxu1 %v1567_v63 }
  0x48   :  { %1362 = vmatmul.mubr.f32.gmra.mrb[18].mxu0 %v230_v11  ;;  %v240_v56 = vmul.f32 0.25, %v208_v52  ;;  %v210_v57 = vfloor.f32 %v178_v47 }
  0x49   :  { %1364 = vmatprep.mubr.f32.mxu0 %v231_v5  ;;  %v241_v58 = vmul.f32 0.25, %v209_v54 }
  0x4a   :  { %v242_v59 = vmul.f32 0.25, %v210_v57  ;;  %1395 = vmatpush3.bf16.msra.mxu0 %v1567_v63  ;;  %1524 = vmatpush3.bf16.msra.mxu1 %v1567_v63 }
  0x4b   :  { %1396 = vmatprep.subr.bf16.mxu0 %v1568_v55  ;;  %1517 = vmatprep.subr.bf16.mxu1 %v1568_v55 }
  0x4c   :  { %1365 = vmatmul.mubr.f32.gmra.mrb[20].mxu0 %v232_v23 }
  0x4d   :  { %1367 = vmatprep.mubr.f32.mxu0 %v233_v24 }
  0x4e   :  { %1397 = vmatpush3.bf16.msra.mxu0 %v1568_v55  ;;  %1525 = vmatpush3.bf16.msra.mxu1 %v1568_v55 }
  0x4f   :  { %1430 = vmatprep.subr.bf16.mxu1 %v1818_v0 }
  0x50   :  { %1368 = vmatmul.mubr.f32.gmra.mrb[22].mxu0 %v234_v34 }
  0x51   :  { %1370 = vmatprep.mubr.f32.mxu0 %v235_v39 }
  0x54   :  { %1371 = vmatmul.mubr.f32.gmra.mrb[24].mxu0 %v236_v43 }
  0x55   :  { %1373 = vmatprep.mubr.f32.mxu0 %v237_v48 }
  0x58   :  { %1374 = vmatmul.mubr.f32.gmra.mrb[26].mxu0 %v238_v51 }
  0x59   :  { %1376 = vmatprep.mubr.f32.mxu0 %v239_v53 }
  0x5c   :  { %1377 = vmatmul.mubr.f32.gmra.mrb[28].mxu0 %v240_v56 }
  0x5d   :  { %1379 = vmatprep.mubr.f32.mxu0 %v241_v58 }
  0x60   :  { %1380 = vmatmul.mubr.f32.gmra.mrb[30].mxu0 %v242_v59 }
  0xf7   :  { %v1336_v1 = vpop.f32.mrb[0].mxu0 }
  0xf8   :  { %v485_v2 = vmul.f32 4.0, %v1336_v1  ;;  %v325_v3 = vpop.f32.mrb[1].mxu0 }
  0xf9   :  { %v484_v4 = vmul.f32 4.0, %v325_v3 }
  0xfa   :  { %v517_v6 = vmax.f32 %v485_v2, 0.0 }
  0xfb   :  { %v516_v7 = vmax.f32 %v484_v4, 0.0  ;;  %v1339_v8 = vpop.f32.mrb[2].mxu0 }
  0xfc   :  { %v549_v9 = vmin.f32 %v517_v6, 4.0  ;;  %v487_v10 = vmul.f32 4.0, %v1339_v8  ;;  %v335_v11 = vpop.f32.mrb[3].mxu0 }
  0xfd   :  { %v548_v12 = vmin.f32 %v516_v7, 4.0  ;;  %v486_v13 = vmul.f32 4.0, %v335_v11 }
  0xfe   :  { %v581_v14 = vadd.f32 0.5, %v549_v9  ;;  %v519_v5 = vmax.f32 %v487_v10, 0.0 }
  0xff   :  { %v580_v15 = vadd.f32 0.5, %v548_v12  ;;  %v518_v16 = vmax.f32 %v486_v13, 0.0  ;;  %v1342_v17 = vpop.f32.mrb[4].mxu0 }
 0x100   :  { %v613_v18 = vfloor.f32 %v581_v14  ;;  %v551_v19 = vmin.f32 %v519_v5, 4.0  ;;  %v489_v20 = vmul.f32 4.0, %v1342_v17  ;;  %v345_v21 = vpop.f32.mrb[5].mxu0 }
 0x101   :  { %v612_v22 = vfloor.f32 %v580_v15  ;;  %v550_v23 = vmin.f32 %v518_v16, 4.0  ;;  %v488_v24 = vmul.f32 4.0, %v345_v21 }
 0x102   :  { %v645_v25 = vmul.f32 0.25, %v613_v18  ;;  %v583_v26 = vadd.f32 0.5, %v551_v19  ;;  %v521_v27 = vmax.f32 %v489_v20, 0.0 }
 0x103   :  { %v644_v28 = vmul.f32 0.25, %v612_v22  ;;  %v582_v29 = vadd.f32 0.5, %v550_v23  ;;  %v520_v30 = vmax.f32 %v488_v24, 0.0  ;;  %v1345_v31 = vpop.f32.mrb[6].mxu0 }
 0x104   :  { %v615_v32 = vfloor.f32 %v583_v26  ;;  %v553_v33 = vmin.f32 %v521_v27, 4.0  ;;  %v491_v34 = vmul.f32 4.0, %v1345_v31  ;;  %v355_v35 = vpop.f32.mrb[7].mxu0 }
 0x105   :  { %v614_v36 = vfloor.f32 %v582_v29  ;;  %v552_v37 = vmin.f32 %v520_v30, 4.0  ;;  %v490_v38 = vmul.f32 4.0, %v355_v35  ;;  %v1821_v39 = vpack.c.bf16 %v645_v25, %v644_v28 }
 0x106   :  { %v647_v40 = vmul.f32 0.25, %v615_v32  ;;  %v585_v41 = vadd.f32 0.5, %v553_v33  ;;  %v523_v42 = vmax.f32 %v491_v34, 0.0 }
 0x107   :  { %v646_v43 = vmul.f32 0.25, %v614_v36  ;;  %v584_v44 = vadd.f32 0.5, %v552_v37  ;;  %v522_v45 = vmax.f32 %v490_v38, 0.0  ;;  %v1348_v46 = vpop.f32.mrb[8].mxu0  ;;  %1398 = vmatprep.mubr.bf16.mxu0 %v1821_v39 }
 0x108   :  { %v617_v48 = vfloor.f32 %v585_v41  ;;  %v555_v49 = vmin.f32 %v523_v42, 4.0  ;;  %v493_v50 = vmul.f32 4.0, %v1348_v46  ;;  %v365_v51 = vpop.f32.mrb[9].mxu0 }
 0x109   :  { %v1824_v52 = vpack.c.bf16 %v647_v40, %v646_v43  ;;  %v616_v47 = vfloor.f32 %v584_v44  ;;  %v554_v53 = vmin.f32 %v522_v45, 4.0  ;;  %v492_v54 = vmul.f32 4.0, %v365_v51 }
 0x10a   :  { %v649_v56 = vmul.f32 0.25, %v617_v48  ;;  %v587_v57 = vadd.f32 0.5, %v555_v49  ;;  %v525_v58 = vmax.f32 %v493_v50, 0.0 }
 0x10b   :  { %v648_v59 = vmul.f32 0.25, %v616_v47  ;;  %v586_v60 = vadd.f32 0.5, %v554_v53  ;;  %v524_v61 = vmax.f32 %v492_v54, 0.0  ;;  %v1351_v62 = vpop.f32.mrb[10].mxu0  ;;  %1399 = vmatmul.mubr.bf16.vlgmr.msra.gmra.mrb[32].mxu0 %v1824_v52 }
 0x10c   :  { %v619_v63 = vfloor.f32 %v587_v57  ;;  %v557_v55 = vmin.f32 %v525_v58, 4.0  ;;  %v495_v1 = vmul.f32 4.0, %v1351_v62  ;;  %v375_v2 = vpop.f32.mrb[11].mxu0 }
 0x10d   :  { %v618_v3 = vfloor.f32 %v586_v60  ;;  %v556_v4 = vmin.f32 %v524_v61, 4.0  ;;  %v494_v6 = vmul.f32 4.0, %v375_v2  ;;  %v1827_v7 = vpack.c.bf16 %v649_v56, %v648_v59 }
 0x10e   :  { %v651_v8 = vmul.f32 0.25, %v619_v63  ;;  %v589_v9 = vadd.f32 0.5, %v557_v55  ;;  %v527_v10 = vmax.f32 %v495_v1, 0.0 }
 0x10f   :  { %v650_v11 = vmul.f32 0.25, %v618_v3  ;;  %v588_v12 = vadd.f32 0.5, %v556_v4  ;;  %v526_v13 = vmax.f32 %v494_v6, 0.0  ;;  %v1354_v14 = vpop.f32.mrb[12].mxu0  ;;  %1402 = vmatprep.mubr.bf16.mxu0 %v1827_v7 }
 0x110   :  { %v621_v5 = vfloor.f32 %v589_v9  ;;  %v559_v15 = vmin.f32 %v527_v10, 4.0  ;;  %v497_v16 = vmul.f32 4.0, %v1354_v14  ;;  %v385_v17 = vpop.f32.mrb[13].mxu0 }
 0x111   :  { %v620_v18 = vfloor.f32 %v588_v12  ;;  %v558_v19 = vmin.f32 %v526_v13, 4.0  ;;  %v496_v20 = vmul.f32 4.0, %v385_v17  ;;  %v1830_v21 = vpack.c.bf16 %v651_v8, %v650_v11 }
 0x112   :  { %v653_v22 = vmul.f32 0.25, %v621_v5  ;;  %v591_v23 = vadd.f32 0.5, %v559_v15  ;;  %v529_v24 = vmax.f32 %v497_v16, 0.0 }
 0x113   :  { %v652_v25 = vmul.f32 0.25, %v620_v18  ;;  %v590_v26 = vadd.f32 0.5, %v558_v19  ;;  %v528_v27 = vmax.f32 %v496_v20, 0.0  ;;  %v1357_v28 = vpop.f32.mrb[14].mxu0  ;;  %1403 = vmatmul.mubr.bf16.gmra.mrb[36].mxu0 %v1830_v21 }
 0x114   :  { %v623_v29 = vfloor.f32 %v591_v23  ;;  %v561_v30 = vmin.f32 %v529_v24, 4.0  ;;  %v499_v31 = vmul.f32 4.0, %v1357_v28  ;;  %v395_v32 = vpop.f32.mrb[15].mxu0 }
 0x115   :  { %v622_v33 = vfloor.f32 %v590_v26  ;;  %v560_v34 = vmin.f32 %v528_v27, 4.0  ;;  %v498_v35 = vmul.f32 4.0, %v395_v32  ;;  %v1833_v36 = vpack.c.bf16 %v653_v22, %v652_v25 }
 0x116   :  { %v655_v37 = vmul.f32 0.25, %v623_v29  ;;  %v593_v38 = vadd.f32 0.5, %v561_v30  ;;  %v531_v40 = vmax.f32 %v499_v31, 0.0 }
 0x117   :  { %v654_v41 = vmul.f32 0.25, %v622_v33  ;;  %v592_v42 = vadd.f32 0.5, %v560_v34  ;;  %v530_v43 = vmax.f32 %v498_v35, 0.0  ;;  %v1360_v44 = vpop.f32.mrb[16].mxu0  ;;  %1406 = vmatprep.mubr.bf16.mxu0 %v1833_v36 }
 0x118   :  { %v625_v45 = vfloor.f32 %v593_v38  ;;  %v563_v46 = vmin.f32 %v531_v40, 4.0  ;;  %v501_v48 = vmul.f32 4.0, %v1360_v44  ;;  %v405_v49 = vpop.f32.mrb[17].mxu0 }
 0x119   :  { %v624_v50 = vfloor.f32 %v592_v42  ;;  %v562_v51 = vmin.f32 %v530_v43, 4.0  ;;  %v500_v47 = vmul.f32 4.0, %v405_v49  ;;  %v1836_v53 = vpack.c.bf16 %v655_v37, %v654_v41 }
 0x11a   :  { %v657_v54 = vmul.f32 0.25, %v625_v45  ;;  %v595_v56 = vadd.f32 0.5, %v563_v46  ;;  %v533_v57 = vmax.f32 %v501_v48, 0.0 }
 0x11b   :  { %v656_v58 = vmul.f32 0.25, %v624_v50  ;;  %v594_v59 = vadd.f32 0.5, %v562_v51  ;;  %v532_v60 = vmax.f32 %v500_v47, 0.0  ;;  %v1363_v61 = vpop.f32.mrb[18].mxu0  ;;  %1407 = vmatmul.mubr.bf16.gmra.mrb[40].mxu0 %v1836_v53 }
 0x11c   :  { %v627_v62 = vfloor.f32 %v595_v56  ;;  %v565_v63 = vmin.f32 %v533_v57, 4.0  ;;  %v503_v55 = vmul.f32 4.0, %v1363_v61  ;;  %v415_v1 = vpop.f32.mrb[19].mxu0 }
 0x11d   :  { %v626_v2 = vfloor.f32 %v594_v59  ;;  %v564_v3 = vmin.f32 %v532_v60, 4.0  ;;  %v502_v4 = vmul.f32 4.0, %v415_v1  ;;  %v1839_v6 = vpack.c.bf16 %v657_v54, %v656_v58  ;;  %v1570_v58 = vld [vmem:[%s1905_s2 + $0x8] sm:$0xff]  }
 0x11e   :  { %v659_v8 = vmul.f32 0.25, %v627_v62  ;;  %v597_v9 = vadd.f32 0.5, %v565_v63  ;;  %v535_v10 = vmax.f32 %v503_v55, 0.0 }
 0x11f   :  { %v658_v11 = vmul.f32 0.25, %v626_v2  ;;  %v596_v12 = vadd.f32 0.5, %v564_v3  ;;  %v534_v13 = vmax.f32 %v502_v4, 0.0  ;;  %v1366_v14 = vpop.f32.mrb[20].mxu0  ;;  %1410 = vmatprep.mubr.bf16.mxu0 %v1839_v6 }
 0x120   :  { %v629_v5 = vfloor.f32 %v597_v9  ;;  %v567_v15 = vmin.f32 %v535_v10, 4.0  ;;  %v505_v16 = vmul.f32 4.0, %v1366_v14  ;;  %v425_v17 = vpop.f32.mrb[21].mxu0 }
 0x121   :  { %v628_v18 = vfloor.f32 %v596_v12  ;;  %v566_v19 = vmin.f32 %v534_v13, 4.0  ;;  %v504_v20 = vmul.f32 4.0, %v425_v17  ;;  %v1842_v22 = vpack.c.bf16 %v659_v8, %v658_v11  ;;  %v1571_v13 = vld [vmem:[%s1905_s2 + $0x10] sm:$0xff]  }
 0x122   :  { %v661_v23 = vmul.f32 0.25, %v629_v5  ;;  %v599_v24 = vadd.f32 0.5, %v567_v15  ;;  %v537_v25 = vmax.f32 %v505_v16, 0.0 }
 0x123   :  { %v660_v26 = vmul.f32 0.25, %v628_v18  ;;  %v598_v27 = vadd.f32 0.5, %v566_v19  ;;  %v536_v28 = vmax.f32 %v504_v20, 0.0  ;;  %v1369_v29 = vpop.f32.mrb[22].mxu0  ;;  %1411 = vmatmul.mubr.bf16.gmra.mrb[44].mxu0 %v1842_v22 }
 0x124   :  { %v631_v30 = vfloor.f32 %v599_v24  ;;  %v569_v31 = vmin.f32 %v537_v25, 4.0  ;;  %v507_v32 = vmul.f32 4.0, %v1369_v29  ;;  %v435_v33 = vpop.f32.mrb[23].mxu0  ;;  %v1572_v29 = vld [vmem:[%s1905_s2 + $0x18] sm:$0xff]  }
 0x125   :  { %v630_v34 = vfloor.f32 %v598_v27  ;;  %v568_v35 = vmin.f32 %v536_v28, 4.0  ;;  %v506_v37 = vmul.f32 4.0, %v435_v33  ;;  %v1845_v38 = vpack.c.bf16 %v661_v23, %v660_v26 }
 0x126   :  { %v663_v40 = vmul.f32 0.25, %v631_v30  ;;  %v601_v41 = vadd.f32 0.5, %v569_v31  ;;  %v539_v42 = vmax.f32 %v507_v32, 0.0 }
 0x127   :  { %v662_v43 = vmul.f32 0.25, %v630_v34  ;;  %v600_v44 = vadd.f32 0.5, %v568_v35  ;;  %v538_v45 = vmax.f32 %v506_v37, 0.0  ;;  %v1372_v46 = vpop.f32.mrb[24].mxu0  ;;  %1414 = vmatprep.mubr.bf16.mxu1 %v1845_v38 }
 0x128   :  { %v633_v48 = vfloor.f32 %v601_v41  ;;  %v571_v49 = vmin.f32 %v539_v42, 4.0  ;;  %v509_v50 = vmul.f32 4.0, %v1372_v46  ;;  %v445_v51 = vpop.f32.mrb[25].mxu0 }
 0x129   :  { %v632_v47 = vfloor.f32 %v600_v44  ;;  %v570_v54 = vmin.f32 %v538_v45, 4.0  ;;  %v508_v56 = vmul.f32 4.0, %v445_v51  ;;  %v1848_v57 = vpack.c.bf16 %v663_v40, %v662_v43 }
 0x12a   :  { %v665_v59 = vmul.f32 0.25, %v633_v48  ;;  %v603_v60 = vadd.f32 0.5, %v571_v49  ;;  %v541_v61 = vmax.f32 %v509_v50, 0.0  ;;  %v1573_v49 = vld [vmem:[%s1905_s2 + $0x20] sm:$0xff]  }
 0x12b   :  { %v664_v62 = vmul.f32 0.25, %v632_v47  ;;  %v602_v63 = vadd.f32 0.5, %v570_v54  ;;  %v540_v55 = vmax.f32 %v508_v56, 0.0  ;;  %v1375_v1 = vpop.f32.mrb[26].mxu0  ;;  %1415 = vmatmul.mubr.bf16.vlgmr.msra.gmra.mrb[0].mxu1 %v1848_v57 }
 0x12c   :  { %v635_v2 = vfloor.f32 %v603_v60  ;;  %v573_v3 = vmin.f32 %v541_v61, 4.0  ;;  %v511_v4 = vmul.f32 4.0, %v1375_v1  ;;  %1431 = vmatpush3.bf16.msra.mxu1 %v1818_v0  ;;  %v455_v8 = vpop.f32.mrb[27].mxu0 }
 0x12d   :  { %v634_v9 = vfloor.f32 %v602_v63  ;;  %v572_v10 = vmin.f32 %v540_v55, 4.0  ;;  %v510_v11 = vmul.f32 4.0, %v455_v8  ;;  %1432 = vmatprep.subr.bf16.mxu1 %v1570_v58  ;;  %v1855_v12 = vpack.c.bf16 %v665_v59, %v664_v62  ;;  %v1574_v55 = vld [vmem:[%s1905_s2 + $0x28] sm:$0xff]  }
 0x12e   :  { %v667_v14 = vmul.f32 0.25, %v635_v2  ;;  %v605_v5 = vadd.f32 0.5, %v573_v3  ;;  %v543_v15 = vmax.f32 %v511_v4, 0.0 }
 0x12f   :  { %v666_v16 = vmul.f32 0.25, %v634_v9  ;;  %v604_v17 = vadd.f32 0.5, %v572_v10  ;;  %v542_v18 = vmax.f32 %v510_v11, 0.0  ;;  %v1378_v19 = vpop.f32.mrb[28].mxu0  ;;  %1418 = vmatprep.mubr.bf16.mxu1 %v1855_v12  ;;  %v1575_v11 = vld [vmem:[%s1905_s2 + $0x30] sm:$0xff]  }
 0x130   :  { %v637_v0 = vfloor.f32 %v605_v5  ;;  %v575_v20 = vmin.f32 %v543_v15, 4.0  ;;  %v513_v23 = vmul.f32 4.0, %v1378_v19  ;;  %1433 = vmatpush3.bf16.msra.mxu1 %v1570_v58  ;;  %v465_v24 = vpop.f32.mrb[29].mxu0  ;;  %v1576_v15 = vld [vmem:[%s1905_s2 + $0x38] sm:$0xff]   ;;  %s1601_s2 = smov [#allocation2]  }
 0x131   :  { %v636_v25 = vfloor.f32 %v604_v17  ;;  %v574_v26 = vmin.f32 %v542_v18, 4.0  ;;  %v512_v27 = vmul.f32 4.0, %v465_v24  ;;  %1434 = vmatprep.subr.bf16.mxu1 %v1571_v13  ;;  %v1861_v28 = vpack.c.bf16 %v667_v14, %v666_v16  ;;  %s1179_s8 = sshll.u32 %s1601_s2, 4  ;;  %s1180_s8 = int_to_ptr.vmem [resolvable:$true] %s1179_s8 }
 0x132   :  { %v669_v30 = vmul.f32 0.25, %v637_v0  ;;  %v607_v31 = vadd.f32 0.5, %v575_v20  ;;  %v545_v32 = vmax.f32 %v513_v23, 0.0  ;;  %s1577_s9 = scalar_lea.vmem %s1180_s8, 4096  ;;  %p1582_p1 = scmp.lt.s32.totalorder %s1180_s8, %s1180_s8 }
 0x133   :  { %v668_v33 = vmul.f32 0.25, %v636_v25  ;;  %v606_v34 = vadd.f32 0.5, %v574_v26  ;;  %v544_v35 = vmax.f32 %v512_v27, 0.0  ;;  %v1381_v37 = vpop.f32.mrb[30].mxu0  ;;  %1419 = vmatmul.mubr.bf16.gmra.mrb[4].mxu1 %v1861_v28  ;;  %p1578_p0 = scmp.ne.s32.totalorder %s1180_s8, %s1577_s9  ;;  %p1583_p2 = scmp.lt.s32.totalorder %s1577_s9, %s1577_s9 }
 0x134   :  { %v639_v40 = vfloor.f32 %v607_v31  ;;  %v577_v41 = vmin.f32 %v545_v32, 4.0  ;;  %v515_v42 = vmul.f32 4.0, %v1381_v37  ;;  %1435 = vmatpush3.bf16.msra.mxu1 %v1571_v13  ;;  %v475_v43 = vpop.f32.mrb[31].mxu0 }
 0x135   :  { %v638_v44 = vfloor.f32 %v606_v34  ;;  %v576_v45 = vmin.f32 %v544_v35, 4.0  ;;  %v514_v46 = vmul.f32 4.0, %v475_v43  ;;  %1436 = vmatprep.subr.bf16.mxu1 %v1572_v29  ;;  %v688_v48 = vpack.c.bf16 %v669_v30, %v668_v33  ;;  %p1584_p3 = por %p1583_p2, %p1582_p1 }
 0x136   :  { %v671_v50 = vmul.f32 0.25, %v639_v40  ;;  %v609_v51 = vadd.f32 0.5, %v577_v41  ;;  %v547_v47 = vmax.f32 %v515_v42, 0.0 }
 0x137   :  { %v670_v54 = vmul.f32 0.25, %v638_v44  ;;  %v608_v56 = vadd.f32 0.5, %v576_v45  ;;  %v546_v58 = vmax.f32 %v514_v46, 0.0  ;;  %1422 = vmatprep.mubr.bf16.mxu1 %v688_v48  ;;  %p1585_p4 = pnand %p1584_p3, %p1578_p0 }
 0x138   :  { %v641_v59 = vfloor.f32 %v609_v51  ;;  %v579_v60 = vmin.f32 %v547_v47, 4.0  ;;  %1437 = vmatpush3.bf16.msra.mxu1 %v1572_v29 }
 0x139   :  { %v640_v61 = vfloor.f32 %v608_v56  ;;  %v578_v62 = vmin.f32 %v546_v58, 4.0  ;;  %1438 = vmatprep.subr.bf16.mxu1 %v1573_v49  ;;  %v689_v63 = vpack.c.bf16 %v671_v50, %v670_v54 }
 0x13a   :  { %v673_v1 = vmul.f32 0.25, %v641_v59  ;;  %v611_v2 = vadd.f32 0.5, %v579_v60 }
 0x13b   :  { %v672_v3 = vmul.f32 0.25, %v640_v61  ;;  %v610_v4 = vadd.f32 0.5, %v578_v62  ;;  %1423 = vmatmul.mubr.bf16.gmra.mrb[8].mxu1 %v689_v63 }
 0x13c   :  { %v643_v8 = vfloor.f32 %v611_v2  ;;  %1439 = vmatpush3.bf16.msra.mxu1 %v1573_v49 }
 0x13d   :  { %v642_v9 = vfloor.f32 %v610_v4  ;;  %1440 = vmatprep.subr.bf16.mxu1 %v1574_v55  ;;  %v690_v10 = vpack.c.bf16 %v673_v1, %v672_v3 }
 0x13e   :  { %v675_v13 = vmul.f32 0.25, %v643_v8 }
 0x13f   :  { %v674_v14 = vmul.f32 0.25, %v642_v9  ;;  %1426 = vmatprep.mubr.bf16.mxu1 %v690_v10 }
 0x140   :  { %1441 = vmatpush3.bf16.msra.mxu1 %v1574_v55 }
 0x141   :  { %1442 = vmatprep.subr.bf16.mxu1 %v1575_v11  ;;  %v691_v5 = vpack.c.bf16 %v675_v13, %v674_v14 }
 0x143   :  { %1427 = vmatmul.mubr.bf16.gmra.mrb[12].mxu1 %v691_v5 }
 0x144   :  { %1443 = vmatpush3.bf16.msra.mxu1 %v1575_v11  ;;  %1446 = vmatprep.mubr.bf16.mxu1 %v1821_v39 }
 0x145   :  { %1444 = vmatprep.subr.bf16.mxu1 %v1576_v15 }
 0x148   :  { %1445 = vmatpush3.bf16.msra.mxu1 %v1576_v15 }
 0x14b   :  { %1447 = vmatmul.mubr.bf16.vlgmr.msra.gmra.mrb[16].mxu1 %v1824_v52 }
 0x14c   :  { %1450 = vmatprep.mubr.bf16.mxu1 %v1827_v7 }
 0x153   :  { %1451 = vmatmul.mubr.bf16.gmra.mrb[20].mxu1 %v1830_v21 }
 0x154   :  { %1454 = vmatprep.mubr.bf16.mxu1 %v1833_v36 }
 0x15b   :  { %1455 = vmatmul.mubr.bf16.gmra.mrb[24].mxu1 %v1836_v53 }
 0x15c   :  { %1458 = vmatprep.mubr.bf16.mxu1 %v1839_v6 }
 0x163   :  { %1459 = vmatmul.mubr.bf16.gmra.mrb[28].mxu1 %v1842_v22 }
 0x164   :  { %1462 = vmatprep.mubr.bf16.mxu1 %v1845_v38 }
 0x16b   :  { %1463 = vmatmul.mubr.bf16.gmra.mrb[0].mxu1 %v1848_v57 }
 0x16c   :  { %1466 = vmatprep.mubr.bf16.mxu1 %v1855_v12 }
 0x173   :  { %1467 = vmatmul.mubr.bf16.gmra.mrb[4].mxu1 %v1861_v28 }
 0x174   :  { %1470 = vmatprep.mubr.bf16.mxu1 %v688_v48 }
 0x17b   :  { %1471 = vmatmul.mubr.bf16.gmra.mrb[8].mxu1 %v689_v63 }
 0x17c   :  { %1474 = vmatprep.mubr.bf16.mxu1 %v690_v10 }
 0x183   :  { %1475 = vmatmul.mubr.bf16.gmra.mrb[12].mxu1 %v691_v5 }
 0x1de   :  { %v1400_v39 = vpop.f32.mrb[32].mxu0 }
 0x1df   :  { %v806_v52 = vpop.f32.mrb[33].mxu0 }
 0x1e0   :  { %v1401_v7 = vpop.f32.mrb[34].mxu0 }
 0x1e1   :  { %v809_v21 = vpop.f32.mrb[35].mxu0 }
 0x1e6   :  { %v1404_v36 = vpop.f32.mrb[36].mxu0 }
 0x1e7   :  { %v822_v53 = vpop.f32.mrb[37].mxu0 }
 0x1e8   :  { %v1405_v6 = vpop.f32.mrb[38].mxu0 }
 0x1e9   :  { %v825_v22 = vpop.f32.mrb[39].mxu0 }
 0x1ee   :  { %v1408_v16 = vpop.f32.mrb[40].mxu0 }
 0x1ef   :  { %v838_v38 = vpop.f32.mrb[41].mxu0 }
 0x1f0   :  { %v1409_v17 = vpop.f32.mrb[42].mxu0 }
 0x1f1   :  { %v841_v57 = vpop.f32.mrb[43].mxu0 }
 0x1f6   :  { %v1412_v18 = vpop.f32.mrb[44].mxu0 }
 0x1f7   :  { %v854_v12 = vpop.f32.mrb[45].mxu0 }
 0x1f8   :  { %v1413_v19 = vpop.f32.mrb[46].mxu0 }
 0x1f9   :  { %v857_v0 = vpop.f32.mrb[47].mxu0 }
 0x21e   :  { %v1448_v20 = vpop.f32.mrb[16].mxu1 }
 0x21f   :  { %v1024_v23 = vadd.f32 %v1448_v20, %v1400_v39  ;;  %v1015_v24 = vpop.f32.mrb[17].mxu1 }
 0x220   :  { %v1016_v25 = vadd.f32 %v1015_v24, %v806_v52  ;;  %v1449_v26 = vpop.f32.mrb[18].mxu1 }
 0x221   :  { %1144 = vst [vmem:[#allocation2 + $0x10] sm:$0xff] %v1024_v23  ;;  %v1027_v27 = vadd.f32 %v1449_v26, %v1401_v7  ;;  %v1018_v28 = vpop.f32.mrb[19].mxu1 }
 0x222   :  { %1142 = vst [vmem:[#allocation2] sm:$0xff] %v1016_v25  ;;  %v1019_v29 = vadd.f32 %v1018_v28, %v809_v21 }
 0x223   :  { %1145 = vst [vmem:[#allocation2 + $0x18] sm:$0xff] %v1027_v27 }
 0x224   :  { %1143 = vst [vmem:[#allocation2 + $0x8] sm:$0xff] %v1019_v29 }
 0x226   :  { %v1452_v30 = vpop.f32.mrb[20].mxu1 }
 0x227   :  { %v1040_v31 = vadd.f32 %v1452_v30, %v1404_v36  ;;  %v1031_v32 = vpop.f32.mrb[21].mxu1 }
 0x228   :  { %v1032_v33 = vadd.f32 %v1031_v32, %v822_v53  ;;  %v1453_v34 = vpop.f32.mrb[22].mxu1 }
 0x229   :  { %1148 = vst [vmem:[#allocation2 + $0x30] sm:$0xff] %v1040_v31  ;;  %v1043_v35 = vadd.f32 %v1453_v34, %v1405_v6  ;;  %v1034_v37 = vpop.f32.mrb[23].mxu1 }
 0x22a   :  { %1146 = vst [vmem:[#allocation2 + $0x20] sm:$0xff] %v1032_v33  ;;  %v1035_v40 = vadd.f32 %v1034_v37, %v825_v22 }
 0x22b   :  { %1149 = vst [vmem:[#allocation2 + $0x38] sm:$0xff] %v1043_v35 }
 0x22c   :  { %1147 = vst [vmem:[#allocation2 + $0x28] sm:$0xff] %v1035_v40 }
 0x22e   :  { %v1456_v41 = vpop.f32.mrb[24].mxu1 }
 0x22f   :  { %v1056_v42 = vadd.f32 %v1456_v41, %v1408_v16  ;;  %v1047_v43 = vpop.f32.mrb[25].mxu1 }
 0x230   :  { %v1048_v44 = vadd.f32 %v1047_v43, %v838_v38  ;;  %v1457_v45 = vpop.f32.mrb[26].mxu1 }
 0x231   :  { %1152 = vst [vmem:[#allocation2 + $0x50] sm:$0xff] %v1056_v42  ;;  %v1059_v46 = vadd.f32 %v1457_v45, %v1409_v17  ;;  %v1050_v48 = vpop.f32.mrb[27].mxu1 }
 0x232   :  { %1150 = vst [vmem:[#allocation2 + $0x40] sm:$0xff] %v1048_v44  ;;  %v1051_v49 = vadd.f32 %v1050_v48, %v841_v57 }
 0x233   :  { %1153 = vst [vmem:[#allocation2 + $0x58] sm:$0xff] %v1059_v46 }
 0x234   :  { %1151 = vst [vmem:[#allocation2 + $0x48] sm:$0xff] %v1051_v49 }
 0x236   :  { %v1460_v50 = vpop.f32.mrb[28].mxu1 }
 0x237   :  { %v1072_v51 = vadd.f32 %v1460_v50, %v1412_v18  ;;  %v1063_v47 = vpop.f32.mrb[29].mxu1 }
 0x238   :  { %v1064_v54 = vadd.f32 %v1063_v47, %v854_v12  ;;  %v1461_v56 = vpop.f32.mrb[30].mxu1 }
 0x239   :  { %1156 = vst [vmem:[#allocation2 + $0x70] sm:$0xff] %v1072_v51  ;;  %v1075_v58 = vadd.f32 %v1461_v56, %v1413_v19  ;;  %v1066_v59 = vpop.f32.mrb[31].mxu1 }
 0x23a   :  { %1154 = vst [vmem:[#allocation2 + $0x60] sm:$0xff] %v1064_v54  ;;  %v1067_v60 = vadd.f32 %v1066_v59, %v857_v0 }
 0x23b   :  { %1157 = vst [vmem:[#allocation2 + $0x78] sm:$0xff] %v1075_v58 }
 0x23c   :  { %1155 = vst [vmem:[#allocation2 + $0x68] sm:$0xff] %v1067_v60 }
 0x23e   :  { %v1464_v61 = vpop.f32.mrb[0].mxu1 }
 0x23f   :  { %1160 = vst [vmem:[#allocation2 + $0x90] sm:$0xff] %v1464_v61  ;;  %v1079_v62 = vpop.f32.mrb[1].mxu1 }
 0x240   :  { %1158 = vst [vmem:[#allocation2 + $0x80] sm:$0xff] %v1079_v62  ;;  %v1465_v63 = vpop.f32.mrb[2].mxu1 }
 0x241   :  { %1161 = vst [vmem:[#allocation2 + $0x98] sm:$0xff] %v1465_v63  ;;  %v1082_v55 = vpop.f32.mrb[3].mxu1 }
 0x242   :  { %1159 = vst [vmem:[#allocation2 + $0x88] sm:$0xff] %v1082_v55 }
 0x246   :  { %v1468_v1 = vpop.f32.mrb[4].mxu1 }
 0x247   :  { %1164 = vst [vmem:[#allocation2 + $0xb0] sm:$0xff] %v1468_v1  ;;  %v1095_v2 = vpop.f32.mrb[5].mxu1 }
 0x248   :  { %1162 = vst [vmem:[#allocation2 + $0xa0] sm:$0xff] %v1095_v2  ;;  %v1469_v3 = vpop.f32.mrb[6].mxu1 }
 0x249   :  { %1165 = vst [vmem:[#allocation2 + $0xb8] sm:$0xff] %v1469_v3  ;;  %v1098_v4 = vpop.f32.mrb[7].mxu1 }
 0x24a   :  { %1163 = vst [vmem:[#allocation2 + $0xa8] sm:$0xff] %v1098_v4 }
 0x24e   :  { %v1472_v8 = vpop.f32.mrb[8].mxu1 }
 0x24f   :  { %1168 = vst [vmem:[#allocation2 + $0xd0] sm:$0xff] %v1472_v8  ;;  %v1111_v9 = vpop.f32.mrb[9].mxu1 }
 0x250   :  { %1166 = vst [vmem:[#allocation2 + $0xc0] sm:$0xff] %v1111_v9  ;;  %v1473_v10 = vpop.f32.mrb[10].mxu1 }
 0x251   :  { %1169 = vst [vmem:[#allocation2 + $0xd8] sm:$0xff] %v1473_v10  ;;  %v1114_v11 = vpop.f32.mrb[11].mxu1 }
 0x252   :  { %1167 = vst [vmem:[#allocation2 + $0xc8] sm:$0xff] %v1114_v11 }
 0x256   :  { %v1476_v13 = vpop.f32.mrb[12].mxu1 }
 0x257   :  { %1172 = vst [vmem:[#allocation2 + $0xf0] sm:$0xff] %v1476_v13  ;;  %v1127_v14 = vpop.f32.mrb[13].mxu1 }
 0x258   :  { %1170 = vst [vmem:[#allocation2 + $0xe0] sm:$0xff] %v1127_v14  ;;  %v1477_v5 = vpop.f32.mrb[14].mxu1 }
 0x259   :  { %1173 = vst [vmem:[#allocation2 + $0xf8] sm:$0xff] %v1477_v5  ;;  %v1130_v15 = vpop.f32.mrb[15].mxu1 }
 0x25a   :  { %1171 = vst [vmem:[#allocation2 + $0xe8] sm:$0xff] %v1130_v15 }
 0x25b   :  { %1588 = shalt.err (!%p1585_p4)
}
 0x25c   :  { %s1589_s11 = scalar_lea.hbm %s1907_s4, 4096 }
 0x25d   :  { %p1590_p5 = scmp.ne.s32.totalorder %s1907_s4, %s1589_s11  ;;  %p1593_p6 = scmp.lt.u32.totalorder %s1589_s11, %s1907_s4 }
 0x25f   :  { %p1595_p7 = pnand %p1593_p6, %p1590_p5 }
 0x261   :  { %1598 = shalt.err (!%p1595_p7)
}
 0x262   :  { %s1602_s16 = smov 128   ;;  %s1603_s17 = smov 8  }
 0x263   :  { %1185 = dma.vmem_to_hbm [thread:$0]  %s1180_s8, 4096, %s1907_s4, [#allocation3], %s1602_s16, %s1602_s16, %s1603_s17  }
 0x264   :  { %1599 = dma.done.wait [#allocation3], 4096  }
 0x265   :  { %1600 = vsyncadd [#allocation3], 4294963200 }
 0x266   :  { %1189 = vsyncpa [#allocation3], 1 }

</bundles_post_ra>
